<compile_context>
chip_gen: v7x
topology: tpu7x:2x2x1
jax: 0.10.0
libtpu: 0.0.40
codegen_flags: <defaults>
</compile_context>

<pallas_src>
import functools

import jax
import jax.numpy as jnp
from jax.experimental import pallas as pl
from jax.experimental.pallas import tpu as pltpu

EPS = 1e-6


# ---------------------------------------------------------------------------
# In-kernel math helpers
# ---------------------------------------------------------------------------
def _erf_approx(x):
    # Abramowitz & Stegun 7.1.26 polynomial, |err| < 1.5e-7 (fp32-level exact).
    # Used instead of lax.erf to guarantee Mosaic lowering (exp/mul/add only).
    a1, a2, a3, a4, a5 = (0.254829592, -0.284496736, 1.421413741,
                          -1.453152027, 1.061405429)
    p = 0.3275911
    sign = jnp.where(x >= 0.0, 1.0, -1.0)
    ax = jnp.abs(x)
    t = 1.0 / (1.0 + p * ax)
    poly = ((((a5 * t + a4) * t + a3) * t + a2) * t + a1) * t
    return sign * (1.0 - poly * jnp.exp(-ax * ax))


def _gelu_exact(x):
    # nn.GELU() default (erf-based, approximate='none').
    # TODO(synk): on v5e a tanh-GELU (EUP) is ~3x cheaper in VALU slots but
    #             differs from exact erf by ~1e-3; kept exact for parity.
    return 0.5 * x * (1.0 + _erf_approx(x * 0.7071067811865476))


def _ada_ln(x, gamma, beta):
    # AdaLayerNorm: torch mean(-1) and std(-1) (unbiased, ddof=1), eps OUTSIDE sqrt.
    mean = jnp.mean(x, axis=-1, keepdims=True)
    var = jnp.sum((x - mean) ** 2, axis=-1, keepdims=True) / (x.shape[-1] - 1)
    inv = pl.reciprocal(jnp.sqrt(var) + EPS)      # exact reciprocal, EUP path
    return gamma * (x - mean) * inv + beta


# ---------------------------------------------------------------------------
# Fused kernel: the whole batch in one invocation (no grid)
# ---------------------------------------------------------------------------
def _cross_attn_block_kernel(
    xq_ref, xk_ref, xv_ref,
    condq_ref, condk_ref, condv_ref,
    wq_t_ref, wk_t_ref, wv_t_ref,
    proj_wt_ref, proj_b_ref,
    fc1_wt_ref, fc1_b_ref, fc2_wt_ref, fc2_b_ref,
    out_ref,
    attn_buf,                                    # VMEM scratch (B, N, Cv)
    *, num_heads, scale, batch):
    xq = xq_ref[...]                             # (B*N, Cq)
    xk = xk_ref[...]                             # (B*M, Ck)
    xv = xv_ref[...]                             # (B*M, Cv)

    Rq, Cq = xq.shape
    Rk, Ck = xk.shape
    Cv = xv.shape[1]
    N = Rq // batch
    M = Rk // batch
    hdq = Cq // num_heads
    hdv = Cv // num_heads

    # --- unpack packed per-row conditioning slabs: [gq|bq|g2|b2], [gk|bk], [gv|bv] ---
    gq = condq_ref[:, 0 * Cq:1 * Cq]
    bq = condq_ref[:, 1 * Cq:2 * Cq]
    g2 = condq_ref[:, 2 * Cq:3 * Cq]
    b2 = condq_ref[:, 3 * Cq:4 * Cq]
    gk = condk_ref[:, 0:Ck]
    bk = condk_ref[:, Ck:2 * Ck]
    gv = condv_ref[:, 0:Cv]
    bv = condv_ref[:, Cv:2 * Cv]

    # --- AdaLayerNorm on q / k / v (all (rows, C), row-wise gamma/beta) ---
    nq = _ada_ln(xq, gq, bq)
    nk = _ada_ln(xk, gk, bk)
    nv = _ada_ln(xv, gv, bv)

    # --- Q / K / V projections over all B*T rows at once (weights are (in, out)) ---
    q = jnp.dot(nq, wq_t_ref[...], preferred_element_type=jnp.float32)   # (B*N, Cq)
    k = jnp.dot(nk, wk_t_ref[...], preferred_element_type=jnp.float32)   # (B*M, Cq)
    v = jnp.dot(nv, wv_t_ref[...], preferred_element_type=jnp.float32)   # (B*M, Cv)

    # --- multi-head attention, batched over the batch dim; per-head outputs are
    #     written into one VMEM slab so the output projection is a single dot ---
    q3 = q.reshape(batch, N, Cq)
    k3 = k.reshape(batch, M, Cq)
    v3 = v.reshape(batch, M, Cv)
    for h in range(num_heads):
        qh = q3[:, :, h * hdq:(h + 1) * hdq]                 # (B, N, hdq)
        kh = k3[:, :, h * hdq:(h + 1) * hdq]                 # (B, M, hdq)
        vh = v3[:, :, h * hdv:(h + 1) * hdv]                 # (B, M, hdv)
        logits = jnp.einsum('bnd,bmd->bnm', qh, kh,
                            preferred_element_type=jnp.float32) * scale
        attn = jax.nn.softmax(logits, axis=-1)               # (B, N, M)
        oh = jnp.einsum('bnm,bmd->bnd', attn, vh,
                        preferred_element_type=jnp.float32)  # (B, N, hdv)
        attn_buf[:, :, h * hdv:(h + 1) * hdv] = oh

    attn_out = attn_buf[...].reshape(Rq, Cv)                 # (B*N, Cv)
    proj = jnp.dot(attn_out, proj_wt_ref[...],
                   preferred_element_type=jnp.float32) + proj_b_ref[...]

    # residual 1 (DropPath / proj_drop / attn_drop == identity in eval mode)
    x1 = xq + proj

    # --- MLP branch: norm2 -> fc1 -> GELU -> fc2 ---
    n2 = _ada_ln(x1, g2, b2)
    hid = jnp.dot(n2, fc1_wt_ref[...],
                  preferred_element_type=jnp.float32) + fc1_b_ref[...]
    hid = _gelu_exact(hid)
    mlp = jnp.dot(hid, fc2_wt_ref[...],
                  preferred_element_type=jnp.float32) + fc2_b_ref[...]

    out_ref[...] = (x1 + mlp).astype(out_ref.dtype)


# ---------------------------------------------------------------------------
# Wrapper: glue (fused AdaLN conditioning GEMM, packing) + pallas_call
# ---------------------------------------------------------------------------
def cross_attention_block(xq, xk, xv, img_feat, params, num_heads):
    B, N, Cq = xq.shape
    _, M, Ck = xk.shape
    Cv = xv.shape[-1]
    Hd = params["fc1_w"].shape[0]
    assert Ck == Cq, "CrossAttention.wk is Linear(q_dim, q_dim): requires k_dim == q_dim"
    assert Cq % num_heads == 0 and Cv % num_heads == 0
    scale = float((Cq // num_heads) ** (-0.5))

    # ---- ONE fused GEMM for all 8 AdaLN conditioning projections on img_feat ----
    w_cond = jnp.concatenate([
        params["normq_gw"], params["normq_bw"],
        params["norm2_gw"], params["norm2_bw"],
        params["normk_gw"], params["normk_bw"],
        params["normv_gw"], params["normv_bw"]], axis=0)       # (4Cq+2Ck+2Cv, 2048)
    b_cond = jnp.concatenate([
        params["normq_gb"], params["normq_bb"],
        params["norm2_gb"], params["norm2_bb"],
        params["normk_gb"], params["normk_bb"],
        params["normv_gb"], params["normv_bb"]], axis=0)
    cond = img_feat @ w_cond.T + b_cond                        # (B, 4Cq+2Ck+2Cv)
    condq = cond[:, :4 * Cq]                                   # [gq|bq|g2|b2]
    condk = cond[:, 4 * Cq:4 * Cq + 2 * Ck]                    # [gk|bk]
    condv = cond[:, 4 * Cq + 2 * Ck:]                          # [gv|bv]

    # broadcast per-batch conditioning to per-row slabs (rows = flattened (B*T))
    condq_rows = jnp.repeat(condq, N, axis=0)                  # (B*N, 4Cq)
    condk_rows = jnp.repeat(condk, M, axis=0)                  # (B*M, 2Ck)
    condv_rows = jnp.repeat(condv, M, axis=0)                  # (B*M, 2Cv)

    # flatten token tensors: the kernel works on (B*T, C) rows
    xq2 = xq.reshape(B * N, Cq)
    xk2 = xk.reshape(B * M, Ck)
    xv2 = xv.reshape(B * M, Cv)

    # pre-transpose weights to (in, out) so the kernel does plain row-major dots
    wq_t = params["wq"].T
    wk_t = params["wk"].T
    wv_t = params["wv"].T
    proj_wt = params["proj_w"].T                               # (Cv, Cq)
    fc1_wt = params["fc1_w"].T                                 # (Cq, Hd)
    fc2_wt = params["fc2_w"].T                                 # (Hd, Cq)
    proj_b = params["proj_b"][None, :]
    fc1_b = params["fc1_b"][None, :]
    fc2_b = params["fc2_b"][None, :]

    operands = (xq2, xk2, xv2, condq_rows, condk_rows, condv_rows,
                wq_t, wk_t, wv_t, proj_wt, proj_b, fc1_wt, fc1_b, fc2_wt, fc2_b)

    # advisory cost estimate so XLA schedules the surrounding glue correctly
    flops = 2 * B * (N * Cq * Cq + M * Ck * Cq + M * Cv * Cv
                     + N * M * Cq + N * M * Cv + N * Cv * Cq + 2 * N * Cq * Hd)
    transcendentals = B * N * (Hd + num_heads * M)
    bytes_accessed = (sum(int(o.size) * o.dtype.itemsize for o in operands)
                      + B * N * Cq * xq.dtype.itemsize)

    kernel = functools.partial(
        _cross_attn_block_kernel, num_heads=num_heads, scale=scale, batch=B)

    vmem = lambda: pl.BlockSpec(memory_space=pltpu.MemorySpace.VMEM)
    out2 = pl.pallas_call(
        kernel,
        out_shape=jax.ShapeDtypeStruct((B * N, Cq), xq.dtype),
        in_specs=[vmem() for _ in operands],
        out_specs=vmem(),
        scratch_shapes=[pltpu.VMEM((B, N, Cv), jnp.float32)],
        cost_estimate=pl.CostEstimate(
            flops=int(flops),
            transcendentals=int(transcendentals),
            bytes_accessed=int(bytes_accessed)),
    )(*operands)
    return out2.reshape(B, N, Cq)


# ---------------------------------------------------------------------------
# Pure-JAX reference (mirrors the PyTorch forward, eval mode)
# ---------------------------------------------------------------------------
def reference_forward(xq, xk, xv, img_feat, p, num_heads):
    B, N, Cq = xq.shape
    M = xk.shape[1]
    Cv = xv.shape[-1]
    scale = (Cq // num_heads) ** (-0.5)

    def ada(x, gw, gb, bw, bb):
        gamma = (img_feat @ gw.T + gb)[:, None, :]
        beta = (img_feat @ bw.T + bb)[:, None, :]
        mean = x.mean(-1, keepdims=True)
        std = jnp.sqrt(jnp.sum((x - mean) ** 2, -1, keepdims=True) / (x.shape[-1] - 1))
        return gamma * (x - mean) / (std + EPS) + beta

    nq = ada(xq, p["normq_gw"], p["normq_gb"], p["normq_bw"], p["normq_bb"])
    nk = ada(xk, p["normk_gw"], p["normk_gb"], p["normk_bw"], p["normk_bb"])
    nv = ada(xv, p["normv_gw"], p["normv_gb"], p["normv_bw"], p["normv_bb"])

    q = nq @ p["wq"].T
    k = nk @ p["wk"].T
    v = nv @ p["wv"].T
    hd, hdv = Cq // num_heads, Cv // num_heads
    qh = q.reshape(B, N, num_heads, hd).transpose(0, 2, 1, 3)
    kh = k.reshape(B, M, num_heads, hd).transpose(0, 2, 1, 3)
    vh = v.reshape(B, M, num_heads, hdv).transpose(0, 2, 1, 3)
    attn = jax.nn.softmax(qh @ kh.transpose(0, 1, 3, 2) * scale, axis=-1)
    o = (attn @ vh).transpose(0, 2, 1, 3).reshape(B, N, Cv)
    o = o @ p["proj_w"].T + p["proj_b"]
    x1 = xq + o

    n2 = ada(x1, p["norm2_gw"], p["norm2_gb"], p["norm2_bw"], p["norm2_bb"])
    h = jax.nn.gelu(n2 @ p["fc1_w"].T + p["fc1_b"], approximate=False)
    return x1 + (h @ p["fc2_w"].T + p["fc2_b"])


# ---------------------------------------------------------------------------
# Deterministic parameter construction (synthetic — no checkpoint)
# ---------------------------------------------------------------------------
def init_params(key, q_dim, k_dim, v_dim, num_heads, mlp_ratio=4.0, img_dim=2048):
    hidden = int(q_dim * mlp_ratio)
    ks = jax.random.split(key, 26)
    w = lambda k, shp, s=0.02: (s * jax.random.normal(k, shp)).astype(jnp.float32)
    p = {}
    # AdaLayerNorm conditioning MLPs: Linear(2048, C) weights/biases
    p["normq_gw"], p["normq_gb"] = w(ks[0], (q_dim, img_dim)), 1.0 + w(ks[1], (q_dim,))
    p["normq_bw"], p["normq_bb"] = w(ks[2], (q_dim, img_dim)), w(ks[3], (q_dim,))
    p["normk_gw"], p["normk_gb"] = w(ks[4], (k_dim, img_dim)), 1.0 + w(ks[5], (k_dim,))
    p["normk_bw"], p["normk_bb"] = w(ks[6], (k_dim, img_dim)), w(ks[7], (k_dim,))
    p["normv_gw"], p["normv_gb"] = w(ks[8], (v_dim, img_dim)), 1.0 + w(ks[9], (v_dim,))
    p["normv_bw"], p["normv_bb"] = w(ks[10], (v_dim, img_dim)), w(ks[11], (v_dim,))
    p["norm2_gw"], p["norm2_gb"] = w(ks[12], (q_dim, img_dim)), 1.0 + w(ks[13], (q_dim,))
    p["norm2_bw"], p["norm2_bb"] = w(ks[14], (q_dim, img_dim)), w(ks[15], (q_dim,))
    # CrossAttention (qkv_bias=False)
    p["wq"] = w(ks[16], (q_dim, q_dim))
    p["wk"] = w(ks[17], (q_dim, q_dim))      # wk = Linear(dim, dim) → requires k_dim == q_dim
    p["wv"] = w(ks[18], (v_dim, v_dim))
    p["proj_w"], p["proj_b"] = w(ks[19], (q_dim, v_dim)), w(ks[20], (q_dim,))
    # Mlp (timm): fc1 -> GELU -> fc2
    p["fc1_w"], p["fc1_b"] = w(ks[21], (hidden, q_dim)), w(ks[22], (hidden,))
    p["fc2_w"], p["fc2_b"] = w(ks[23], (q_dim, hidden)), w(ks[24], (q_dim,))
    return p


if __name__ == "__main__":
    B = 2
    N = 8            # query tokens
    KV = 8           # kv_num
    q_dim = k_dim = 32
    v_dim = 16
    num_heads = 4
    img_dim = 2048

    key = jax.random.PRNGKey(0)
    k1, k2, k3, k4, kp = jax.random.split(key, 5)
    xq = jax.random.normal(k1, (B, N, q_dim), jnp.float32)
    xk = jax.random.normal(k2, (B, KV, k_dim), jnp.float32)
    xv = jax.random.normal(k3, (B, KV, v_dim), jnp.float32)
    img_feat = jax.random.normal(k4, (B, img_dim), jnp.float32)
    params = init_params(kp, q_dim, k_dim, v_dim, num_heads)

    out = cross_attention_block(xq, xk, xv, img_feat, params, num_heads)
    out = jax.block_until_ready(out)

    ref = reference_forward(xq, xk, xv, img_feat, params, num_heads)
    assert out.shape == (B, N, q_dim), out.shape
    max_err = float(jnp.max(jnp.abs(out - ref)))
    assert jnp.allclose(out, ref, atol=3e-5, rtol=3e-5), f"max_err={max_err}"
    print("KERNEL_OK")
</pallas_src>

<mosaic_0001>
module attributes {stable_mosaic.version = 11 : i64} {
  func.func @_cross_attn_block_kernel(%arg0: memref<16x32xf32, #tpu.memory_space<vmem>>, %arg1: memref<16x32xf32, #tpu.memory_space<vmem>>, %arg2: memref<16x16xf32, #tpu.memory_space<vmem>>, %arg3: memref<16x128xf32, #tpu.memory_space<vmem>>, %arg4: memref<16x64xf32, #tpu.memory_space<vmem>>, %arg5: memref<16x32xf32, #tpu.memory_space<vmem>>, %arg6: memref<32x32xf32, #tpu.memory_space<vmem>>, %arg7: memref<32x32xf32, #tpu.memory_space<vmem>>, %arg8: memref<16x16xf32, #tpu.memory_space<vmem>>, %arg9: memref<16x32xf32, #tpu.memory_space<vmem>>, %arg10: memref<1x32xf32, #tpu.memory_space<vmem>>, %arg11: memref<32x128xf32, #tpu.memory_space<vmem>>, %arg12: memref<1x128xf32, #tpu.memory_space<vmem>>, %arg13: memref<128x32xf32, #tpu.memory_space<vmem>>, %arg14: memref<1x32xf32, #tpu.memory_space<vmem>>, %arg15: memref<16x32xf32, #tpu.memory_space<vmem>>, %arg16: memref<2x8x16xf32, #tpu.memory_space<vmem>>) attributes {dimension_semantics = [], scalar_prefetch = 0 : i64, scratch_operands = 1 : i64, tpu.core_type = #tpu.core_type<tc>} {
    %c0 = arith.constant 0 : index
    %c0_0 = arith.constant 0 : index
    %0 = vector.load %arg0[%c0, %c0_0] : memref<16x32xf32, #tpu.memory_space<vmem>>, vector<16x32xf32>
    %c0_1 = arith.constant 0 : index
    %c0_2 = arith.constant 0 : index
    %1 = vector.load %arg1[%c0_1, %c0_2] : memref<16x32xf32, #tpu.memory_space<vmem>>, vector<16x32xf32>
    %c0_3 = arith.constant 0 : index
    %c0_4 = arith.constant 0 : index
    %2 = vector.load %arg2[%c0_3, %c0_4] : memref<16x16xf32, #tpu.memory_space<vmem>>, vector<16x16xf32>
    %c0_5 = arith.constant 0 : index
    %c0_6 = arith.constant 0 : index
    %3 = vector.load %arg3[%c0_5, %c0_6] : memref<16x128xf32, #tpu.memory_space<vmem>>, vector<16x32xf32>
    %c0_7 = arith.constant 0 : index
    %c32 = arith.constant 32 : index
    %4 = vector.load %arg3[%c0_7, %c32] : memref<16x128xf32, #tpu.memory_space<vmem>>, vector<16x32xf32>
    %c0_8 = arith.constant 0 : index
    %c64 = arith.constant 64 : index
    %5 = vector.load %arg3[%c0_8, %c64] : memref<16x128xf32, #tpu.memory_space<vmem>>, vector<16x32xf32>
    %c0_9 = arith.constant 0 : index
    %c96 = arith.constant 96 : index
    %6 = vector.load %arg3[%c0_9, %c96] : memref<16x128xf32, #tpu.memory_space<vmem>>, vector<16x32xf32>
    %c0_10 = arith.constant 0 : index
    %c0_11 = arith.constant 0 : index
    %7 = vector.load %arg4[%c0_10, %c0_11] : memref<16x64xf32, #tpu.memory_space<vmem>>, vector<16x32xf32>
    %c0_12 = arith.constant 0 : index
    %c32_13 = arith.constant 32 : index
    %8 = vector.load %arg4[%c0_12, %c32_13] : memref<16x64xf32, #tpu.memory_space<vmem>>, vector<16x32xf32>
    %c0_14 = arith.constant 0 : index
    %c0_15 = arith.constant 0 : index
    %9 = vector.load %arg5[%c0_14, %c0_15] : memref<16x32xf32, #tpu.memory_space<vmem>>, vector<16x16xf32>
    %c0_16 = arith.constant 0 : index
    %c16 = arith.constant 16 : index
    %10 = vector.load %arg5[%c0_16, %c16] : memref<16x32xf32, #tpu.memory_space<vmem>>, vector<16x16xf32>
    %cst = arith.constant dense<0.000000e+00> : vector<16xf32>
    %11 = vector.multi_reduction <add>, %0, %cst [1] : vector<16x32xf32> to vector<16xf32>
    %12 = vector.shape_cast %11 : vector<16xf32> to vector<16x1xf32>
    %cst_17 = arith.constant 3.200000e+01 : f32
    %13 = vector.broadcast %cst_17 : f32 to vector<16x1xf32>
    %14 = arith.divf %12, %13 : vector<16x1xf32>
    %15 = vector.broadcast %14 : vector<16x1xf32> to vector<16x32xf32>
    %16 = arith.subf %0, %15 : vector<16x32xf32>
    %17 = arith.mulf %16, %16 : vector<16x32xf32>
    %cst_18 = arith.constant dense<0.000000e+00> : vector<16xf32>
    %18 = vector.multi_reduction <add>, %17, %cst_18 [1] : vector<16x32xf32> to vector<16xf32>
    %19 = vector.shape_cast %18 : vector<16xf32> to vector<16x1xf32>
    %cst_19 = arith.constant 3.100000e+01 : f32
    %20 = vector.broadcast %cst_19 : f32 to vector<16x1xf32>
    %21 = arith.divf %19, %20 : vector<16x1xf32>
    %22 = math.sqrt %21 : vector<16x1xf32>
    %cst_20 = arith.constant 9.99999997E-7 : f32
    %23 = vector.broadcast %cst_20 : f32 to vector<16x1xf32>
    %24 = arith.addf %22, %23 : vector<16x1xf32>
    %25 = tpu.reciprocal %24 : vector<16x1xf32> -> vector<16x1xf32>
    %26 = vector.broadcast %14 : vector<16x1xf32> to vector<16x32xf32>
    %27 = arith.subf %0, %26 : vector<16x32xf32>
    %28 = arith.mulf %3, %27 : vector<16x32xf32>
    %29 = vector.broadcast %25 : vector<16x1xf32> to vector<16x32xf32>
    %30 = arith.mulf %28, %29 : vector<16x32xf32>
    %31 = arith.addf %30, %4 : vector<16x32xf32>
    %cst_21 = arith.constant dense<0.000000e+00> : vector<16xf32>
    %32 = vector.multi_reduction <add>, %1, %cst_21 [1] : vector<16x32xf32> to vector<16xf32>
    %33 = vector.shape_cast %32 : vector<16xf32> to vector<16x1xf32>
    %cst_22 = arith.constant 3.200000e+01 : f32
    %34 = vector.broadcast %cst_22 : f32 to vector<16x1xf32>
    %35 = arith.divf %33, %34 : vector<16x1xf32>
    %36 = vector.broadcast %35 : vector<16x1xf32> to vector<16x32xf32>
    %37 = arith.subf %1, %36 : vector<16x32xf32>
    %38 = arith.mulf %37, %37 : vector<16x32xf32>
    %cst_23 = arith.constant dense<0.000000e+00> : vector<16xf32>
    %39 = vector.multi_reduction <add>, %38, %cst_23 [1] : vector<16x32xf32> to vector<16xf32>
    %40 = vector.shape_cast %39 : vector<16xf32> to vector<16x1xf32>
    %cst_24 = arith.constant 3.100000e+01 : f32
    %41 = vector.broadcast %cst_24 : f32 to vector<16x1xf32>
    %42 = arith.divf %40, %41 : vector<16x1xf32>
    %43 = math.sqrt %42 : vector<16x1xf32>
    %cst_25 = arith.constant 9.99999997E-7 : f32
    %44 = vector.broadcast %cst_25 : f32 to vector<16x1xf32>
    %45 = arith.addf %43, %44 : vector<16x1xf32>
    %46 = tpu.reciprocal %45 : vector<16x1xf32> -> vector<16x1xf32>
    %47 = vector.broadcast %35 : vector<16x1xf32> to vector<16x32xf32>
    %48 = arith.subf %1, %47 : vector<16x32xf32>
    %49 = arith.mulf %7, %48 : vector<16x32xf32>
    %50 = vector.broadcast %46 : vector<16x1xf32> to vector<16x32xf32>
    %51 = arith.mulf %49, %50 : vector<16x32xf32>
    %52 = arith.addf %51, %8 : vector<16x32xf32>
    %cst_26 = arith.constant dense<0.000000e+00> : vector<16xf32>
    %53 = vector.multi_reduction <add>, %2, %cst_26 [1] : vector<16x16xf32> to vector<16xf32>
    %54 = vector.shape_cast %53 : vector<16xf32> to vector<16x1xf32>
    %cst_27 = arith.constant 1.600000e+01 : f32
    %55 = vector.broadcast %cst_27 : f32 to vector<16x1xf32>
    %56 = arith.divf %54, %55 : vector<16x1xf32>
    %57 = vector.broadcast %56 : vector<16x1xf32> to vector<16x16xf32>
    %58 = arith.subf %2, %57 : vector<16x16xf32>
    %59 = arith.mulf %58, %58 : vector<16x16xf32>
    %cst_28 = arith.constant dense<0.000000e+00> : vector<16xf32>
    %60 = vector.multi_reduction <add>, %59, %cst_28 [1] : vector<16x16xf32> to vector<16xf32>
    %61 = vector.shape_cast %60 : vector<16xf32> to vector<16x1xf32>
    %cst_29 = arith.constant 1.500000e+01 : f32
    %62 = vector.broadcast %cst_29 : f32 to vector<16x1xf32>
    %63 = arith.divf %61, %62 : vector<16x1xf32>
    %64 = math.sqrt %63 : vector<16x1xf32>
    %cst_30 = arith.constant 9.99999997E-7 : f32
    %65 = vector.broadcast %cst_30 : f32 to vector<16x1xf32>
    %66 = arith.addf %64, %65 : vector<16x1xf32>
    %67 = tpu.reciprocal %66 : vector<16x1xf32> -> vector<16x1xf32>
    %68 = vector.broadcast %56 : vector<16x1xf32> to vector<16x16xf32>
    %69 = arith.subf %2, %68 : vector<16x16xf32>
    %70 = arith.mulf %9, %69 : vector<16x16xf32>
    %71 = vector.broadcast %67 : vector<16x1xf32> to vector<16x16xf32>
    %72 = arith.mulf %70, %71 : vector<16x16xf32>
    %73 = arith.addf %72, %10 : vector<16x16xf32>
    %c0_31 = arith.constant 0 : index
    %c0_32 = arith.constant 0 : index
    %74 = vector.load %arg6[%c0_31, %c0_32] : memref<32x32xf32, #tpu.memory_space<vmem>>, vector<32x32xf32>
    %cst_33 = arith.constant dense<0.000000e+00> : vector<16x32xf32>
    %75 = tpu.matmul %31, %74, %cst_33 {dimension_numbers = #tpu.dot_dimension_numbers<[1], [0], [0], [1], [0, 0, 1, 1], [], []>} : vector<16x32xf32>, vector<32x32xf32>, vector<16x32xf32> -> vector<16x32xf32>
    %c0_34 = arith.constant 0 : index
    %c0_35 = arith.constant 0 : index
    %76 = vector.load %arg7[%c0_34, %c0_35] : memref<32x32xf32, #tpu.memory_space<vmem>>, vector<32x32xf32>
    %cst_36 = arith.constant dense<0.000000e+00> : vector<16x32xf32>
    %77 = tpu.matmul %52, %76, %cst_36 {dimension_numbers = #tpu.dot_dimension_numbers<[1], [0], [0], [1], [0, 0, 1, 1], [], []>} : vector<16x32xf32>, vector<32x32xf32>, vector<16x32xf32> -> vector<16x32xf32>
    %c0_37 = arith.constant 0 : index
    %c0_38 = arith.constant 0 : index
    %78 = vector.load %arg8[%c0_37, %c0_38] : memref<16x16xf32, #tpu.memory_space<vmem>>, vector<16x16xf32>
    %cst_39 = arith.constant dense<0.000000e+00> : vector<16x16xf32>
    %79 = tpu.matmul %73, %78, %cst_39 {dimension_numbers = #tpu.dot_dimension_numbers<[1], [0], [0], [1], [0, 0, 1, 1], [], []>} : vector<16x16xf32>, vector<16x16xf32>, vector<16x16xf32> -> vector<16x16xf32>
    %80 = vector.shape_cast %75 : vector<16x32xf32> to vector<2x8x32xf32>
    %81 = vector.shape_cast %77 : vector<16x32xf32> to vector<2x8x32xf32>
    %82 = vector.shape_cast %79 : vector<16x16xf32> to vector<2x8x16xf32>
    %83 = vector.extract_strided_slice %80 {offsets = [0, 0, 0], sizes = [2, 8, 8], strides = [1, 1, 1]} : vector<2x8x32xf32> to vector<2x8x8xf32>
    %84 = vector.extract_strided_slice %81 {offsets = [0, 0, 0], sizes = [2, 8, 8], strides = [1, 1, 1]} : vector<2x8x32xf32> to vector<2x8x8xf32>
    %85 = vector.extract_strided_slice %82 {offsets = [0, 0, 0], sizes = [2, 8, 4], strides = [1, 1, 1]} : vector<2x8x16xf32> to vector<2x8x4xf32>
    "tpu.trace_start"() <{level = 10 : i32, message = "bnd,bmd->bnm"}> : () -> ()
    %cst_40 = arith.constant dense<0.000000e+00> : vector<2x8x8xf32>
    %86 = tpu.matmul %83, %84, %cst_40 {dimension_numbers = #tpu.dot_dimension_numbers<[2], [2], [1], [1], [0, 0, 0, 1, 1, 1], [0], [0]>} : vector<2x8x8xf32>, vector<2x8x8xf32>, vector<2x8x8xf32> -> vector<2x8x8xf32>
    "tpu.trace_stop"() : () -> ()
    %cst_41 = arith.constant 0.353553385 : f32
    %87 = vector.broadcast %cst_41 : f32 to vector<2x8x8xf32>
    %88 = arith.mulf %86, %87 : vector<2x8x8xf32>
    %cst_42 = arith.constant dense<0xFF800000> : vector<2x8xf32>
    %89 = vector.multi_reduction <maximumf>, %88, %cst_42 [2] : vector<2x8x8xf32> to vector<2x8xf32>
    %cst_43 = arith.constant 0xFF800000 : f32
    %90 = vector.broadcast %cst_43 : f32 to vector<2x8xf32>
    %91 = arith.maximumf %90, %89 : vector<2x8xf32>
    %92 = vector.shape_cast %91 : vector<2x8xf32> to vector<2x8x1xf32>
    %93 = vector.broadcast %92 : vector<2x8x1xf32> to vector<2x8x8xf32>
    %94 = arith.subf %88, %93 : vector<2x8x8xf32>
    %95 = math.exp %94 : vector<2x8x8xf32>
    %cst_44 = arith.constant dense<0.000000e+00> : vector<2x8xf32>
    %96 = vector.multi_reduction <add>, %95, %cst_44 [2] : vector<2x8x8xf32> to vector<2x8xf32>
    %97 = vector.shape_cast %96 : vector<2x8xf32> to vector<2x8x1xf32>
    %98 = vector.broadcast %97 : vector<2x8x1xf32> to vector<2x8x8xf32>
    %99 = arith.divf %95, %98 : vector<2x8x8xf32>
    "tpu.trace_start"() <{level = 10 : i32, message = "bnm,bmd->bnd"}> : () -> ()
    %cst_45 = arith.constant dense<0.000000e+00> : vector<2x8x4xf32>
    %100 = tpu.matmul %99, %85, %cst_45 {dimension_numbers = #tpu.dot_dimension_numbers<[2], [1], [1], [2], [0, 0, 0, 1, 1, 2], [0], [0]>} : vector<2x8x8xf32>, vector<2x8x4xf32>, vector<2x8x4xf32> -> vector<2x8x4xf32>
    "tpu.trace_stop"() : () -> ()
    %c0_46 = arith.constant 0 : index
    %c0_47 = arith.constant 0 : index
    %c0_48 = arith.constant 0 : index
    %101 = vector.load %arg16[%c0_46, %c0_47, %c0_48] : memref<2x8x16xf32, #tpu.memory_space<vmem>>, vector<2x8x4xf32>
    tpu.vector_store %arg16[%c0_46, %c0_47, %c0_48], %100 {strides = array<i32>} : memref<2x8x16xf32, #tpu.memory_space<vmem>>, vector<2x8x4xf32>,
    %102 = vector.extract_strided_slice %80 {offsets = [0, 0, 8], sizes = [2, 8, 8], strides = [1, 1, 1]} : vector<2x8x32xf32> to vector<2x8x8xf32>
    %103 = vector.extract_strided_slice %81 {offsets = [0, 0, 8], sizes = [2, 8, 8], strides = [1, 1, 1]} : vector<2x8x32xf32> to vector<2x8x8xf32>
    %104 = vector.extract_strided_slice %82 {offsets = [0, 0, 4], sizes = [2, 8, 4], strides = [1, 1, 1]} : vector<2x8x16xf32> to vector<2x8x4xf32>
    "tpu.trace_start"() <{level = 10 : i32, message = "bnd,bmd->bnm"}> : () -> ()
    %cst_49 = arith.constant dense<0.000000e+00> : vector<2x8x8xf32>
    %105 = tpu.matmul %102, %103, %cst_49 {dimension_numbers = #tpu.dot_dimension_numbers<[2], [2], [1], [1], [0, 0, 0, 1, 1, 1], [0], [0]>} : vector<2x8x8xf32>, vector<2x8x8xf32>, vector<2x8x8xf32> -> vector<2x8x8xf32>
    "tpu.trace_stop"() : () -> ()
    %cst_50 = arith.constant 0.353553385 : f32
    %106 = vector.broadcast %cst_50 : f32 to vector<2x8x8xf32>
    %107 = arith.mulf %105, %106 : vector<2x8x8xf32>
    %cst_51 = arith.constant dense<0xFF800000> : vector<2x8xf32>
    %108 = vector.multi_reduction <maximumf>, %107, %cst_51 [2] : vector<2x8x8xf32> to vector<2x8xf32>
    %cst_52 = arith.constant 0xFF800000 : f32
    %109 = vector.broadcast %cst_52 : f32 to vector<2x8xf32>
    %110 = arith.maximumf %109, %108 : vector<2x8xf32>
    %111 = vector.shape_cast %110 : vector<2x8xf32> to vector<2x8x1xf32>
    %112 = vector.broadcast %111 : vector<2x8x1xf32> to vector<2x8x8xf32>
    %113 = arith.subf %107, %112 : vector<2x8x8xf32>
    %114 = math.exp %113 : vector<2x8x8xf32>
    %cst_53 = arith.constant dense<0.000000e+00> : vector<2x8xf32>
    %115 = vector.multi_reduction <add>, %114, %cst_53 [2] : vector<2x8x8xf32> to vector<2x8xf32>
    %116 = vector.shape_cast %115 : vector<2x8xf32> to vector<2x8x1xf32>
    %117 = vector.broadcast %116 : vector<2x8x1xf32> to vector<2x8x8xf32>
    %118 = arith.divf %114, %117 : vector<2x8x8xf32>
    "tpu.trace_start"() <{level = 10 : i32, message = "bnm,bmd->bnd"}> : () -> ()
    %cst_54 = arith.constant dense<0.000000e+00> : vector<2x8x4xf32>
    %119 = tpu.matmul %118, %104, %cst_54 {dimension_numbers = #tpu.dot_dimension_numbers<[2], [1], [1], [2], [0, 0, 0, 1, 1, 2], [0], [0]>} : vector<2x8x8xf32>, vector<2x8x4xf32>, vector<2x8x4xf32> -> vector<2x8x4xf32>
    "tpu.trace_stop"() : () -> ()
    %c0_55 = arith.constant 0 : index
    %c0_56 = arith.constant 0 : index
    %c4 = arith.constant 4 : index
    %120 = vector.load %arg16[%c0_55, %c0_56, %c4] : memref<2x8x16xf32, #tpu.memory_space<vmem>>, vector<2x8x4xf32>
    tpu.vector_store %arg16[%c0_55, %c0_56, %c4], %119 {strides = array<i32>} : memref<2x8x16xf32, #tpu.memory_space<vmem>>, vector<2x8x4xf32>,
    %121 = vector.extract_strided_slice %80 {offsets = [0, 0, 16], sizes = [2, 8, 8], strides = [1, 1, 1]} : vector<2x8x32xf32> to vector<2x8x8xf32>
    %122 = vector.extract_strided_slice %81 {offsets = [0, 0, 16], sizes = [2, 8, 8], strides = [1, 1, 1]} : vector<2x8x32xf32> to vector<2x8x8xf32>
    %123 = vector.extract_strided_slice %82 {offsets = [0, 0, 8], sizes = [2, 8, 4], strides = [1, 1, 1]} : vector<2x8x16xf32> to vector<2x8x4xf32>
    "tpu.trace_start"() <{level = 10 : i32, message = "bnd,bmd->bnm"}> : () -> ()
    %cst_57 = arith.constant dense<0.000000e+00> : vector<2x8x8xf32>
    %124 = tpu.matmul %121, %122, %cst_57 {dimension_numbers = #tpu.dot_dimension_numbers<[2], [2], [1], [1], [0, 0, 0, 1, 1, 1], [0], [0]>} : vector<2x8x8xf32>, vector<2x8x8xf32>, vector<2x8x8xf32> -> vector<2x8x8xf32>
    "tpu.trace_stop"() : () -> ()
    %cst_58 = arith.constant 0.353553385 : f32
    %125 = vector.broadcast %cst_58 : f32 to vector<2x8x8xf32>
    %126 = arith.mulf %124, %125 : vector<2x8x8xf32>
    %cst_59 = arith.constant dense<0xFF800000> : vector<2x8xf32>
    %127 = vector.multi_reduction <maximumf>, %126, %cst_59 [2] : vector<2x8x8xf32> to vector<2x8xf32>
    %cst_60 = arith.constant 0xFF800000 : f32
    %128 = vector.broadcast %cst_60 : f32 to vector<2x8xf32>
    %129 = arith.maximumf %128, %127 : vector<2x8xf32>
    %130 = vector.shape_cast %129 : vector<2x8xf32> to vector<2x8x1xf32>
    %131 = vector.broadcast %130 : vector<2x8x1xf32> to vector<2x8x8xf32>
    %132 = arith.subf %126, %131 : vector<2x8x8xf32>
    %133 = math.exp %132 : vector<2x8x8xf32>
    %cst_61 = arith.constant dense<0.000000e+00> : vector<2x8xf32>
    %134 = vector.multi_reduction <add>, %133, %cst_61 [2] : vector<2x8x8xf32> to vector<2x8xf32>
    %135 = vector.shape_cast %134 : vector<2x8xf32> to vector<2x8x1xf32>
    %136 = vector.broadcast %135 : vector<2x8x1xf32> to vector<2x8x8xf32>
    %137 = arith.divf %133, %136 : vector<2x8x8xf32>
    "tpu.trace_start"() <{level = 10 : i32, message = "bnm,bmd->bnd"}> : () -> ()
    %cst_62 = arith.constant dense<0.000000e+00> : vector<2x8x4xf32>
    %138 = tpu.matmul %137, %123, %cst_62 {dimension_numbers = #tpu.dot_dimension_numbers<[2], [1], [1], [2], [0, 0, 0, 1, 1, 2], [0], [0]>} : vector<2x8x8xf32>, vector<2x8x4xf32>, vector<2x8x4xf32> -> vector<2x8x4xf32>
    "tpu.trace_stop"() : () -> ()
    %c0_63 = arith.constant 0 : index
    %c0_64 = arith.constant 0 : index
    %c8 = arith.constant 8 : index
    %139 = vector.load %arg16[%c0_63, %c0_64, %c8] : memref<2x8x16xf32, #tpu.memory_space<vmem>>, vector<2x8x4xf32>
    tpu.vector_store %arg16[%c0_63, %c0_64, %c8], %138 {strides = array<i32>} : memref<2x8x16xf32, #tpu.memory_space<vmem>>, vector<2x8x4xf32>,
    %140 = vector.extract_strided_slice %80 {offsets = [0, 0, 24], sizes = [2, 8, 8], strides = [1, 1, 1]} : vector<2x8x32xf32> to vector<2x8x8xf32>
    %141 = vector.extract_strided_slice %81 {offsets = [0, 0, 24], sizes = [2, 8, 8], strides = [1, 1, 1]} : vector<2x8x32xf32> to vector<2x8x8xf32>
    %142 = vector.extract_strided_slice %82 {offsets = [0, 0, 12], sizes = [2, 8, 4], strides = [1, 1, 1]} : vector<2x8x16xf32> to vector<2x8x4xf32>
    "tpu.trace_start"() <{level = 10 : i32, message = "bnd,bmd->bnm"}> : () -> ()
    %cst_65 = arith.constant dense<0.000000e+00> : vector<2x8x8xf32>
    %143 = tpu.matmul %140, %141, %cst_65 {dimension_numbers = #tpu.dot_dimension_numbers<[2], [2], [1], [1], [0, 0, 0, 1, 1, 1], [0], [0]>} : vector<2x8x8xf32>, vector<2x8x8xf32>, vector<2x8x8xf32> -> vector<2x8x8xf32>
    "tpu.trace_stop"() : () -> ()
    %cst_66 = arith.constant 0.353553385 : f32
    %144 = vector.broadcast %cst_66 : f32 to vector<2x8x8xf32>
    %145 = arith.mulf %143, %144 : vector<2x8x8xf32>
    %cst_67 = arith.constant dense<0xFF800000> : vector<2x8xf32>
    %146 = vector.multi_reduction <maximumf>, %145, %cst_67 [2] : vector<2x8x8xf32> to vector<2x8xf32>
    %cst_68 = arith.constant 0xFF800000 : f32
    %147 = vector.broadcast %cst_68 : f32 to vector<2x8xf32>
    %148 = arith.maximumf %147, %146 : vector<2x8xf32>
    %149 = vector.shape_cast %148 : vector<2x8xf32> to vector<2x8x1xf32>
    %150 = vector.broadcast %149 : vector<2x8x1xf32> to vector<2x8x8xf32>
    %151 = arith.subf %145, %150 : vector<2x8x8xf32>
    %152 = math.exp %151 : vector<2x8x8xf32>
    %cst_69 = arith.constant dense<0.000000e+00> : vector<2x8xf32>
    %153 = vector.multi_reduction <add>, %152, %cst_69 [2] : vector<2x8x8xf32> to vector<2x8xf32>
    %154 = vector.shape_cast %153 : vector<2x8xf32> to vector<2x8x1xf32>
    %155 = vector.broadcast %154 : vector<2x8x1xf32> to vector<2x8x8xf32>
    %156 = arith.divf %152, %155 : vector<2x8x8xf32>
    "tpu.trace_start"() <{level = 10 : i32, message = "bnm,bmd->bnd"}> : () -> ()
    %cst_70 = arith.constant dense<0.000000e+00> : vector<2x8x4xf32>
    %157 = tpu.matmul %156, %142, %cst_70 {dimension_numbers = #tpu.dot_dimension_numbers<[2], [1], [1], [2], [0, 0, 0, 1, 1, 2], [0], [0]>} : vector<2x8x8xf32>, vector<2x8x4xf32>, vector<2x8x4xf32> -> vector<2x8x4xf32>
    "tpu.trace_stop"() : () -> ()
    %c0_71 = arith.constant 0 : index
    %c0_72 = arith.constant 0 : index
    %c12 = arith.constant 12 : index
    %158 = vector.load %arg16[%c0_71, %c0_72, %c12] : memref<2x8x16xf32, #tpu.memory_space<vmem>>, vector<2x8x4xf32>
    tpu.vector_store %arg16[%c0_71, %c0_72, %c12], %157 {strides = array<i32>} : memref<2x8x16xf32, #tpu.memory_space<vmem>>, vector<2x8x4xf32>,
    %c0_73 = arith.constant 0 : index
    %c0_74 = arith.constant 0 : index
    %c0_75 = arith.constant 0 : index
    %159 = vector.load %arg16[%c0_73, %c0_74, %c0_75] : memref<2x8x16xf32, #tpu.memory_space<vmem>>, vector<2x8x16xf32>
    %160 = vector.shape_cast %159 : vector<2x8x16xf32> to vector<16x16xf32>
    %c0_76 = arith.constant 0 : index
    %c0_77 = arith.constant 0 : index
    %161 = vector.load %arg9[%c0_76, %c0_77] : memref<16x32xf32, #tpu.memory_space<vmem>>, vector<16x32xf32>
    %cst_78 = arith.constant dense<0.000000e+00> : vector<16x32xf32>
    %162 = tpu.matmul %160, %161, %cst_78 {dimension_numbers = #tpu.dot_dimension_numbers<[1], [0], [0], [1], [0, 0, 1, 1], [], []>} : vector<16x16xf32>, vector<16x32xf32>, vector<16x32xf32> -> vector<16x32xf32>
    %c0_79 = arith.constant 0 : index
    %c0_80 = arith.constant 0 : index
    %163 = vector.load %arg10[%c0_79, %c0_80] : memref<1x32xf32, #tpu.memory_space<vmem>>, vector<1x32xf32>
    %164 = vector.broadcast %163 : vector<1x32xf32> to vector<16x32xf32>
    %165 = arith.addf %162, %164 : vector<16x32xf32>
    %166 = arith.addf %0, %165 : vector<16x32xf32>
    %cst_81 = arith.constant dense<0.000000e+00> : vector<16xf32>
    %167 = vector.multi_reduction <add>, %166, %cst_81 [1] : vector<16x32xf32> to vector<16xf32>
    %168 = vector.shape_cast %167 : vector<16xf32> to vector<16x1xf32>
    %cst_82 = arith.constant 3.200000e+01 : f32
    %169 = vector.broadcast %cst_82 : f32 to vector<16x1xf32>
    %170 = arith.divf %168, %169 : vector<16x1xf32>
    %171 = vector.broadcast %170 : vector<16x1xf32> to vector<16x32xf32>
    %172 = arith.subf %166, %171 : vector<16x32xf32>
    %173 = arith.mulf %172, %172 : vector<16x32xf32>
    %cst_83 = arith.constant dense<0.000000e+00> : vector<16xf32>
    %174 = vector.multi_reduction <add>, %173, %cst_83 [1] : vector<16x32xf32> to vector<16xf32>
    %175 = vector.shape_cast %174 : vector<16xf32> to vector<16x1xf32>
    %cst_84 = arith.constant 3.100000e+01 : f32
    %176 = vector.broadcast %cst_84 : f32 to vector<16x1xf32>
    %177 = arith.divf %175, %176 : vector<16x1xf32>
    %178 = math.sqrt %177 : vector<16x1xf32>
    %cst_85 = arith.constant 9.99999997E-7 : f32
    %179 = vector.broadcast %cst_85 : f32 to vector<16x1xf32>
    %180 = arith.addf %178, %179 : vector<16x1xf32>
    %181 = tpu.reciprocal %180 : vector<16x1xf32> -> vector<16x1xf32>
    %182 = vector.broadcast %170 : vector<16x1xf32> to vector<16x32xf32>
    %183 = arith.subf %166, %182 : vector<16x32xf32>
    %184 = arith.mulf %5, %183 : vector<16x32xf32>
    %185 = vector.broadcast %181 : vector<16x1xf32> to vector<16x32xf32>
    %186 = arith.mulf %184, %185 : vector<16x32xf32>
    %187 = arith.addf %186, %6 : vector<16x32xf32>
    %c0_86 = arith.constant 0 : index
    %c0_87 = arith.constant 0 : index
    %188 = vector.load %arg11[%c0_86, %c0_87] : memref<32x128xf32, #tpu.memory_space<vmem>>, vector<32x128xf32>
    %cst_88 = arith.constant dense<0.000000e+00> : vector<16x128xf32>
    %189 = tpu.matmul %187, %188, %cst_88 {dimension_numbers = #tpu.dot_dimension_numbers<[1], [0], [0], [1], [0, 0, 1, 1], [], []>} : vector<16x32xf32>, vector<32x128xf32>, vector<16x128xf32> -> vector<16x128xf32>
    %c0_89 = arith.constant 0 : index
    %c0_90 = arith.constant 0 : index
    %190 = vector.load %arg12[%c0_89, %c0_90] : memref<1x128xf32, #tpu.memory_space<vmem>>, vector<1x128xf32>
    %191 = vector.broadcast %190 : vector<1x128xf32> to vector<16x128xf32>
    %192 = arith.addf %189, %191 : vector<16x128xf32>
    %cst_91 = arith.constant 5.000000e-01 : f32
    %193 = vector.broadcast %cst_91 : f32 to vector<16x128xf32>
    %194 = arith.mulf %193, %192 : vector<16x128xf32>
    %cst_92 = arith.constant 0.707106769 : f32
    %195 = vector.broadcast %cst_92 : f32 to vector<16x128xf32>
    %196 = arith.mulf %192, %195 : vector<16x128xf32>
    %cst_93 = arith.constant 0.000000e+00 : f32
    %197 = vector.broadcast %cst_93 : f32 to vector<16x128xf32>
    %198 = arith.cmpf oge, %196, %197 : vector<16x128xf32>
    %cst_94 = arith.constant 1.000000e+00 : f32
    %cst_95 = arith.constant -1.000000e+00 : f32
    %199 = vector.broadcast %cst_94 : f32 to vector<16x128xf32>
    %200 = vector.broadcast %cst_95 : f32 to vector<16x128xf32>
    %201 = arith.select %198, %199, %200 : vector<16x128xi1>, vector<16x128xf32>
    %202 = math.absf %196 : vector<16x128xf32>
    %cst_96 = arith.constant 0.327591091 : f32
    %203 = vector.broadcast %cst_96 : f32 to vector<16x128xf32>
    %204 = arith.mulf %203, %202 : vector<16x128xf32>
    %cst_97 = arith.constant 1.000000e+00 : f32
    %205 = vector.broadcast %cst_97 : f32 to vector<16x128xf32>
    %206 = arith.addf %205, %204 : vector<16x128xf32>
    %cst_98 = arith.constant 1.000000e+00 : f32
    %207 = vector.broadcast %cst_98 : f32 to vector<16x128xf32>
    %208 = arith.divf %207, %206 : vector<16x128xf32>
    %cst_99 = arith.constant 1.06140542 : f32
    %209 = vector.broadcast %cst_99 : f32 to vector<16x128xf32>
    %210 = arith.mulf %209, %208 : vector<16x128xf32>
    %cst_100 = arith.constant -1.45315206 : f32
    %211 = vector.broadcast %cst_100 : f32 to vector<16x128xf32>
    %212 = arith.addf %210, %211 : vector<16x128xf32>
    %213 = arith.mulf %212, %208 : vector<16x128xf32>
    %cst_101 = arith.constant 1.42141378 : f32
    %214 = vector.broadcast %cst_101 : f32 to vector<16x128xf32>
    %215 = arith.addf %213, %214 : vector<16x128xf32>
    %216 = arith.mulf %215, %208 : vector<16x128xf32>
    %cst_102 = arith.constant -0.284496725 : f32
    %217 = vector.broadcast %cst_102 : f32 to vector<16x128xf32>
    %218 = arith.addf %216, %217 : vector<16x128xf32>
    %219 = arith.mulf %218, %208 : vector<16x128xf32>
    %cst_103 = arith.constant 0.254829586 : f32
    %220 = vector.broadcast %cst_103 : f32 to vector<16x128xf32>
    %221 = arith.addf %219, %220 : vector<16x128xf32>
    %222 = arith.mulf %221, %208 : vector<16x128xf32>
    %cst_104 = arith.constant 0.000000e+00 : f32
    %223 = vector.broadcast %cst_104 : f32 to vector<16x128xf32>
    %224 = arith.subf %223, %202 : vector<16x128xf32>
    %225 = arith.mulf %224, %202 : vector<16x128xf32>
    %226 = math.exp %225 : vector<16x128xf32>
    %227 = arith.mulf %222, %226 : vector<16x128xf32>
    %cst_105 = arith.constant 1.000000e+00 : f32
    %228 = vector.broadcast %cst_105 : f32 to vector<16x128xf32>
    %229 = arith.subf %228, %227 : vector<16x128xf32>
    %230 = arith.mulf %201, %229 : vector<16x128xf32>
    %cst_106 = arith.constant 1.000000e+00 : f32
    %231 = vector.broadcast %cst_106 : f32 to vector<16x128xf32>
    %232 = arith.addf %231, %230 : vector<16x128xf32>
    %233 = arith.mulf %194, %232 : vector<16x128xf32>
    %c0_107 = arith.constant 0 : index
    %c0_108 = arith.constant 0 : index
    %234 = vector.load %arg13[%c0_107, %c0_108] : memref<128x32xf32, #tpu.memory_space<vmem>>, vector<128x32xf32>
    %cst_109 = arith.constant dense<0.000000e+00> : vector<16x32xf32>
    %235 = tpu.matmul %233, %234, %cst_109 {dimension_numbers = #tpu.dot_dimension_numbers<[1], [0], [0], [1], [0, 0, 1, 1], [], []>} : vector<16x128xf32>, vector<128x32xf32>, vector<16x32xf32> -> vector<16x32xf32>
    %c0_110 = arith.constant 0 : index
    %c0_111 = arith.constant 0 : index
    %236 = vector.load %arg14[%c0_110, %c0_111] : memref<1x32xf32, #tpu.memory_space<vmem>>, vector<1x32xf32>
    %237 = vector.broadcast %236 : vector<1x32xf32> to vector<16x32xf32>
    %238 = arith.addf %235, %237 : vector<16x32xf32>
    %239 = arith.addf %166, %238 : vector<16x32xf32>
    %c0_112 = arith.constant 0 : index
    %c0_113 = arith.constant 0 : index
    %240 = vector.load %arg15[%c0_112, %c0_113] : memref<16x32xf32, #tpu.memory_space<vmem>>, vector<16x32xf32>
    tpu.vector_store %arg15[%c0_112, %c0_113], %239 {strides = array<i32>} : memref<16x32xf32, #tpu.memory_space<vmem>>, vector<16x32xf32>,
    return
  }
}

</mosaic_0001>

<bundles_post_ra>
// kernel: tpu_custom_call.1
= control target key start
LH: loop header
LB: loop body
LE: loop exit
PB: predicated region body
PF: predicated region fallthrough
CT: control target
= control target key end

     0   :  { %20 = vsyncpa [#allocation4], 0  ;;  %s3405_s0 = inlined_call_operand.vmem [shape: f32[16,32], index: 0, kind: input, shape index: {}]   ;;  %s3406_s1 = inlined_call_operand.vmem [shape: f32[16,32], index: 1, kind: input, shape index: {}]   ;;  %s3407_s2 = inlined_call_operand.vmem [shape: f32[16,16], index: 2, kind: input, shape index: {}]   ;;  %s3408_s3 = inlined_call_operand.vmem [shape: f32[16,128], index: 3, kind: input, shape index: {}]   ;;  %s3409_s4 = inlined_call_operand.hbm [shape: f32[16,64], index: 4, kind: input, shape index: {}]   ;;  %s3410_s5 = inlined_call_operand.vmem [shape: f32[16,32], index: 5, kind: input, shape index: {}]   ;;  %s3411_s6 = inlined_call_operand.vmem [shape: f32[32,32], index: 6, kind: input, shape index: {}]   ;;  %s3412_s7 = inlined_call_operand.vmem [shape: f32[32,32], index: 7, kind: input, shape index: {}]   ;;  %s3413_s8 = inlined_call_operand.hbm [shape: f32[16,16], index: 8, kind: input, shape index: {}]   ;;  %s3414_s9 = inlined_call_operand.hbm [shape: f32[16,32], index: 9, kind: input, shape index: {}]   ;;  %s3415_s10 = inlined_call_operand.vmem [shape: f32[1,32], index: 10, kind: input, shape index: {}]   ;;  %s3416_s11 = inlined_call_operand.vmem [shape: f32[32,128], index: 11, kind: input, shape index: {}]   ;;  %s3417_s12 = inlined_call_operand.hbm [shape: f32[1,128], index: 12, kind: input, shape index: {}]   ;;  %s3418_s13 = inlined_call_operand.vmem [shape: f32[128,32], index: 13, kind: input, shape index: {}]   ;;  %s3419_s14 = inlined_call_operand.vmem [shape: f32[1,32], index: 14, kind: input, shape index: {}]   ;;  %s3420_s15 = inlined_call_operand.hbm [shape: f32[16,32], index: 15, kind: output, shape index: {}]  }
   0x1   :  { %21 = vsyncpa [#allocation7], 0 }
   0x2   :  { %22 = vsyncpa [#allocation10], 0 }
   0x3   :  { %23 = vsyncpa [#allocation5], 0  ;;  %s2855_s18 = smov [#allocation6]   ;;  %s2856_s20 = smov [#allocation3]  }
   0x4   :  { %s55_s19 = sshll.u32 %s2855_s18, 4  ;;  %s37_s21 = sshll.u32 %s2856_s20, 4  ;;  %s56_s19 = int_to_ptr.vmem [resolvable:$true] %s55_s19  ;;  %s2954_s21 = int_to_ptr.vmem [resolvable:$true] %s37_s21 }
   0x5   :  { %s2737_s24 = scalar_lea.hbm %s3413_s8, 256 }
   0x6   :  { %p2738_p0 = scmp.ne.s32.totalorder %s3413_s8, %s2737_s24  ;;  %p2741_p1 = scmp.lt.u32.totalorder %s2737_s24, %s3413_s8 }
   0x8   :  { %p2743_p2 = pnand %p2741_p1, %p2738_p0 }
   0xa   :  { %2746 = shalt.err (!%p2743_p2)
}
   0xb   :  { %s2747_s29 = scalar_lea.vmem %s56_s19, 256  ;;  %p2752_p4 = scmp.lt.s32.totalorder %s56_s19, %s56_s19 }
   0xc   :  { %p2748_p3 = scmp.ne.s32.totalorder %s56_s19, %s2747_s29  ;;  %p2753_p5 = scmp.lt.s32.totalorder %s2747_s29, %s2747_s29 }
   0xe   :  { %p2754_p6 = por %p2753_p5, %p2752_p4 }
  0x10   :  { %p2755_p7 = pnand %p2754_p6, %p2748_p3 }
  0x12   :  { %2758 = shalt.err (!%p2755_p7)
}
  0x13   :  { %s2857_s30 = smov 128   ;;  %s2858_s16 = smov 8  }
  0x14   :  { %61 = dma.hbm_to_vmem [thread:$0]  %s3413_s8, 256, %s56_s19, [#allocation7], %s2857_s30, %s2857_s30, %s2858_s16  }
  0x15   :  { %s2759_s23 = scalar_lea.hbm %s3409_s4, 256 }
  0x16   :  { %p2760_p8 = scmp.ne.s32.totalorder %s3409_s4, %s2759_s23  ;;  %p2763_p9 = scmp.lt.u32.totalorder %s2759_s23, %s3409_s4 }
  0x18   :  { %p2765_p10 = pnand %p2763_p9, %p2760_p8 }
  0x1a   :  { %2768 = shalt.err (!%p2765_p10)
}
  0x1b   :  { %s2769_s28 = scalar_lea.vmem %s2954_s21, 256  ;;  %p2774_p12 = scmp.lt.s32.totalorder %s2954_s21, %s2954_s21 }
  0x1c   :  { %p2770_p11 = scmp.ne.s32.totalorder %s2954_s21, %s2769_s28  ;;  %p2775_p13 = scmp.lt.s32.totalorder %s2769_s28, %s2769_s28 }
  0x1e   :  { %p2776_p0 = por %p2775_p13, %p2774_p12 }
  0x20   :  { %p2777_p1 = pnand %p2776_p0, %p2770_p11 }
  0x22   :  { %2780 = shalt.err (!%p2777_p1)
}
  0x23   :  { %43 = dma.hbm_to_vmem [thread:$0]  %s3409_s4, 256, %s2954_s21, [#allocation4], %s2857_s30, %s2857_s30, %s2858_s16  }
  0x24   :  { %s2859_s29 = smov [#allocation8]   ;;  %s2860_s18 = smov [#allocation9]  }
  0x25   :  { %s67_s17 = sshll.u32 %s2859_s29, 4  ;;  %s84_s20 = sshll.u32 %s2860_s18, 4  ;;  %s68_s17 = int_to_ptr.vmem [resolvable:$true] %s67_s17  ;;  %s85_s20 = int_to_ptr.vmem [resolvable:$true] %s84_s20 }
  0x26   :  { %s2781_s24 = scalar_lea.hbm %s3414_s9, 256 }
  0x27   :  { %p2782_p2 = scmp.ne.s32.totalorder %s3414_s9, %s2781_s24  ;;  %p2785_p3 = scmp.lt.u32.totalorder %s2781_s24, %s3414_s9 }
  0x29   :  { %p2787_p4 = pnand %p2785_p3, %p2782_p2 }
  0x2b   :  { %2790 = shalt.err (!%p2787_p4)
}
  0x2c   :  { %s2791_s4 = scalar_lea.vmem %s68_s17, 256  ;;  %p2796_p6 = scmp.lt.s32.totalorder %s68_s17, %s68_s17 }
  0x2d   :  { %p2792_p5 = scmp.ne.s32.totalorder %s68_s17, %s2791_s4  ;;  %p2797_p7 = scmp.lt.s32.totalorder %s2791_s4, %s2791_s4 }
  0x2f   :  { %p2798_p8 = por %p2797_p7, %p2796_p6 }
  0x31   :  { %p2799_p9 = pnand %p2798_p8, %p2792_p5 }
  0x33   :  { %2802 = shalt.err (!%p2799_p9)
}
  0x34   :  { %73 = dma.hbm_to_vmem [thread:$0]  %s3414_s9, 256, %s68_s17, [#allocation7], %s2857_s30, %s2857_s30, %s2858_s16  }
  0x35   :  { %s2803_s18 = scalar_lea.hbm %s3417_s12, 16 }
  0x36   :  { %p2804_p10 = scmp.ne.s32.totalorder %s3417_s12, %s2803_s18  ;;  %p2807_p11 = scmp.lt.u32.totalorder %s2803_s18, %s3417_s12 }
  0x38   :  { %p2809_p12 = pnand %p2807_p11, %p2804_p10 }
  0x3a   :  { %2812 = shalt.err (!%p2809_p12)
}
  0x3b   :  { %s2813_s26 = scalar_lea.vmem %s85_s20, 16  ;;  %s2817_s27 = scalar_lea.vmem %s85_s20, 32 }
  0x3c   :  { %p2814_p13 = scmp.ne.s32.totalorder %s85_s20, %s2813_s26  ;;  %p2818_p0 = scmp.lt.s32.totalorder %s85_s20, %s85_s20 }
  0x3d   :  { %p2819_p1 = scmp.lt.s32.totalorder %s2817_s27, %s2813_s26 }
  0x3f   :  { %p2820_p2 = por %p2819_p1, %p2818_p0 }
  0x41   :  { %p2821_p3 = pnand %p2820_p2, %p2814_p13 }
  0x43   :  { %2824 = shalt.err (!%p2821_p3)
}
  0x44   :  { %87 = dma.hbm_to_vmem [thread:$0]  %s3417_s12, 16, %s85_s20, [#allocation10]  }
  0x45   :  { %2847 = dma.done.wait [#allocation4], 256  }
  0x46   :  { %2848 = vsyncadd [#allocation4], 4294967040 }
  0x47   :  { %2849 = dma.done.wait [#allocation7], 512  }
  0x48   :  { %2850 = vsyncadd [#allocation7], 4294966784 }
  0x49   :  { %2851 = dma.done.wait [#allocation10], 16  }
  0x4a   :  { %2852 = vsyncadd [#allocation10], 4294967280  ;;  %vm116_vm0 = vcmask 261120   ;;  %v3021_v0 = vld [vmem:[%s3405_s0] sm:$0xff]  ;;  %v3029_v2 = vld [vmem:[%s3405_s0 + $0x8] sm:$0xff]  ;;  %s2861_s18 = smov 96  }
  0x4b   :  { %v106_v1 = vld [vmem:[%s3406_s1] sm:$0xff]  ;;  %v117_v3 = vsel %vm116_vm0, %v3021_v0, 0.0  ;;  %v107_v5 = vld [vmem:[%s3406_s1 + $0x8] sm:$0xff]  ;;  %v120_v6 = vsel %vm116_vm0, %v3029_v2, 0.0  ;;  %v112_v14 = vld [vmem:[#allocation3] sm:$0xff]  ;;  %vm223_vm1 = vcmask 130048  }
  0x4c   :  { %v171_v4 = vsel %vm116_vm0, %v106_v1, 0.0  ;;  %118 = vadd.xlane.f32.xlu0 %v117_v3  ;;  %v174_v7 = vsel %vm116_vm0, %v107_v5, 0.0  ;;  %v113_v22 = vld [vmem:[#allocation3 + $0x8] sm:$0xff]  ;;  %v3061_v32 = vld [vmem:[%s3408_s3 + $0x8] sm:$0xff]  ;;  %v3067_v33 = vld [vmem:[%s3408_s3] sm:$0xff]  ;;  %s2862_s22 = smov 112  }
  0x4d   :  { %172 = vadd.xlane.f32.xlu1 %v171_v4  ;;  %v278_v34 = vld [vmem:[%s3411_s6] sm:$0xff]  ;;  %v279_v35 = vld [vmem:[%s3411_s6 + $0x8] sm:$0xff]  ;;  %v280_v37 = vld [vmem:[%s3411_s6 + $0x10] sm:$0xff]  ;;  %vm2864_vm10 = vmmov 0   ;;  %vm531_vm15 = vcmask 64512   ;;  %s2866_s27 = smov 124  }
  0x4e   :  { %v2580_v36 = vpack.c.bf16 %v279_v35, %v278_v34  ;;  %v281_v38 = vld [vmem:[%s3411_s6 + $0x18] sm:$0xff]  ;;  %v363_v40 = vld [vmem:[%s3412_s7] sm:$0xff]  ;;  %v364_v41 = vld [vmem:[%s3412_s7 + $0x8] sm:$0xff]  ;;  %s2867_s9 = smov 104   ;;  %s2868_s17 = smov 116  }
  0x4f   :  { %v2584_v39 = vpack.c.bf16 %v281_v38, %v280_v37  ;;  %v3088_v42 = vpack.c.bf16 %v364_v41, %v363_v40  ;;  %v3093_v43 = vld [vmem:[%s3407_s2] sm:$0xff]  ;;  %v3101_v45 = vld [vmem:[%s3407_s2 + $0x8] sm:$0xff]  ;;  %s2869_s28 = smov 4   ;;  %s2870_s4 = smov 12  }
  0x50   :  { %121 = vadd.xlane.f32.xlu0 %v120_v6  ;;  %2581 = vmatprep.subr.bf16.mxu0 %v2580_v36  ;;  %v224_v44 = vsel %vm223_vm1, %v3093_v43, 0.0  ;;  %v227_v46 = vsel %vm223_vm1, %v3101_v45, 0.0  ;;  %v3108_v47 = vld [vmem:[%s3410_s5 + $0x8] sm:$0xff] }
  0x51   :  { %175 = vadd.xlane.f32.xlu1 %v174_v7  ;;  %2583 = vmatpush3.bf16.msra.mxu0 %v2580_v36 }
  0x52   :  { %2585 = vmatprep.subr.bf16.mxu0 %v2584_v39 }
  0x55   :  { %2587 = vmatpush3.bf16.msra.mxu0 %v2584_v39 }
  0x56   :  { %2589 = vmatprep.subr.bf16.mxu0 %v3088_v42 }
  0xd9   :  { %v119_v8 = vpop.xlane.xlu0 %118 }
  0xda   :  { %v173_v9 = vpop.xlane.xlu1 %172  ;;  %v124_v10 = vmul.f32 0.03125, %v119_v8 }
  0xdb   :  { %v177_v11 = vmul.f32 0.03125, %v173_v9 }
  0xdc   :  { %v3041_v12 = vsub.f32 %v3021_v0, %v124_v10 }
  0xdd   :  { %v179_v13 = vsub.f32 %v106_v1, %v177_v11  ;;  %v122_v15 = vpop.xlane.xlu0 %121 }
  0xde   :  { %v176_v16 = vpop.xlane.xlu1 %175  ;;  %v125_v17 = vmul.f32 0.03125, %v122_v15  ;;  %v128_v19 = vmul.f32 %v3041_v12, %v3041_v12 }
  0xdf   :  { %v178_v18 = vmul.f32 0.03125, %v176_v16  ;;  %v181_v20 = vmul.f32 %v179_v13, %v179_v13  ;;  %v3045_v21 = vmul.f32 %v179_v13, %v112_v14 }
  0xe0   :  { %v3048_v23 = vsub.f32 %v3029_v2, %v125_v17  ;;  %v130_v25 = vsel %vm116_vm0, %v128_v19, 0.0  ;;  %v157_v19 = vmul.f32 %v3041_v12, %v3067_v33  ;;  %v366_v12 = vld [vmem:[%s3412_s7 + $0x18] sm:$0xff] }
  0xe1   :  { %v180_v24 = vsub.f32 %v107_v5, %v178_v18  ;;  %131 = vadd.xlane.f32.xlu0 %v130_v25  ;;  %v183_v26 = vsel %vm116_vm0, %v181_v20, 0.0 }
  0xe2   :  { %v129_v27 = vmul.f32 %v3048_v23, %v3048_v23 }
  0xe3   :  { %v182_v28 = vmul.f32 %v180_v24, %v180_v24  ;;  %v3054_v29 = vmul.f32 %v180_v24, %v113_v22 }
  0xe4   :  { %v133_v30 = vsel %vm116_vm0, %v129_v27, 0.0 }
  0xe5   :  { %184 = vadd.xlane.f32.xlu0 %v183_v26  ;;  %134 = vadd.xlane.f32.xlu1 %v133_v30  ;;  %v186_v31 = vsel %vm116_vm0, %v182_v28, 0.0  ;;  %v158_v26 = vmul.f32 %v3048_v23, %v3061_v32  ;;  %v365_v30 = vld [vmem:[%s3412_s7 + $0x10] sm:$0xff] }
  0xe9   :  { %187 = vadd.xlane.f32.xlu1 %v186_v31 }
  0xfa   :  { %165 = vrot.lane.b32.xlu1 %v3061_v32, %s2861_s18  ;;  %v2592_v32 = vpack.c.bf16 %v366_v12, %v365_v30 }
  0xfb   :  { %163 = vrot.lane.b32.xlu0 %v3067_v33, %s2861_s18 }
  0xfe   :  { %215 = vrot.lane.b32.xlu1 %v112_v14, %s2861_s18 }
 0x102   :  { %217 = vrot.lane.b32.xlu1 %v113_v22, %s2861_s18 }
 0x11a   :  { %225 = vadd.xlane.f32.xlu0 %v224_v44  ;;  %v114_v44 = vld [vmem:[%s3410_s5] sm:$0xff]  ;;  %s2865_s5 = smov 120  }
 0x126   :  { %228 = vadd.xlane.f32.xlu1 %v227_v46 }
 0x137   :  { %272 = vrot.lane.b32.xlu1 %v3108_v47, %s2862_s22 }
 0x16e   :  { %v132_v48 = vpop.xlane.xlu0 %131 }
 0x16f   :  { %v137_v49 = vmul.f32 0.032258064, %v132_v48 }
 0x171   :  { %2663 = vrsqrt.f32 %v137_v49  ;;  %vm141_vm2 = vcmp.eq.f32.partialorder %v137_v49, inf  ;;  %v144_v58 = vand.u32 2147483648, %v137_v49  ;;  %vm143_vm3 = vcmp.eq.f32.partialorder %v137_v49, 0.0 }
 0x172   :  { %v135_v50 = vpop.xlane.xlu1 %134  ;;  %v185_v51 = vpop.xlane.xlu0 %184 }
 0x173   :  { %v138_v52 = vmul.f32 0.032258064, %v135_v50  ;;  %v189_v53 = vmul.f32 0.032258064, %v185_v51 }
 0x175   :  { %2665 = vrsqrt.f32 %v138_v52  ;;  %vm148_vm4 = vcmp.eq.f32.partialorder %v138_v52, inf  ;;  %v151_v3 = vand.u32 2147483648, %v138_v52  ;;  %vm193_vm5 = vcmp.eq.f32.partialorder %v189_v53, inf }
 0x176   :  { %2667 = vrsqrt.f32 %v189_v53  ;;  %v188_v54 = vpop.xlane.xlu1 %187  ;;  %v196_v5 = vand.u32 2147483648, %v189_v53  ;;  %vm150_vm6 = vcmp.eq.f32.partialorder %v138_v52, 0.0  ;;  %vm195_vm7 = vcmp.eq.f32.partialorder %v189_v53, 0.0  ;;  %v3116_v25 = vpop.permute.xlu0 %163 }
 0x177   :  { %v190_v55 = vmul.f32 0.032258064, %v188_v54  ;;  %v448_v54 = vld [vmem:[#allocation6] sm:$0xff] }
 0x179   :  { %2669 = vrsqrt.f32 %v190_v55  ;;  %vm200_vm8 = vcmp.eq.f32.partialorder %v190_v55, inf  ;;  %v203_v14 = vand.u32 2147483648, %v190_v55  ;;  %vm202_vm9 = vcmp.eq.f32.partialorder %v190_v55, 0.0 }
 0x17a   :  { %v3114_v22 = vpop.permute.xlu1 %165 }
 0x17b   :  { %v2664_v56 = vpop.eup %2663 }
 0x17c   :  { %v140_v57 = vmul.f32 %v2664_v56, %v137_v49 }
 0x17e   :  { %v142_v59 = vsel %vm141_vm2, %v137_v49, %v140_v57  ;;  %v216_v23 = vpop.permute.xlu1 %215  ;;  %vm854_vm2 = vcmask 31744  }
 0x17f   :  { %v2666_v60 = vpop.eup %2665  ;;  %v145_v61 = vsel %vm143_vm3, %v144_v58, %v142_v59  ;;  %vm1199_vm3 = vcmask 64544  }
 0x180   :  { %v2668_v62 = vpop.eup %2667  ;;  %v147_v63 = vmul.f32 %v2666_v60, %v138_v52  ;;  %v153_v1 = vadd.f32 1e-06, %v145_v61 }
 0x181   :  { %v192_v4 = vmul.f32 %v2668_v62, %v189_v53 }
 0x182   :  { %v149_v6 = vsel %vm148_vm4, %v138_v52, %v147_v63  ;;  %2671 = vrcp.f32 %v153_v1  ;;  %v218_v39 = vpop.permute.xlu1 %217  ;;  %vm1542_vm4 = vcmask 97344  }
 0x183   :  { %v2670_v7 = vpop.eup %2669  ;;  %v152_v8 = vsel %vm150_vm6, %v151_v3, %v149_v6  ;;  %v194_v9 = vsel %vm193_vm5, %v189_v53, %v192_v4  ;;  %vm1885_vm5 = vcmask 130144  }
 0x184   :  { %v199_v10 = vmul.f32 %v2670_v7, %v190_v55  ;;  %v154_v11 = vadd.f32 1e-06, %v152_v8  ;;  %v197_v13 = vsel %vm195_vm7, %v196_v5, %v194_v9 }
 0x185   :  { %v205_v15 = vadd.f32 1e-06, %v197_v13 }
 0x186   :  { %2673 = vrcp.f32 %v154_v11  ;;  %v201_v16 = vsel %vm200_vm8, %v190_v55, %v199_v10  ;;  %v449_v55 = vld [vmem:[#allocation6 + $0x8] sm:$0xff] }
 0x187   :  { %2675 = vrcp.f32 %v205_v15  ;;  %v204_v17 = vsel %vm202_vm9, %v203_v14, %v201_v16  ;;  %v2596_v56 = vpack.c.bf16 %v449_v55, %v448_v54 }
 0x188   :  { %v206_v18 = vadd.f32 1e-06, %v204_v17 }
 0x18a   :  { %2677 = vrcp.f32 %v206_v18 }
 0x18c   :  { %v2672_v20 = vpop.eup %2671 }
 0x18d   :  { %v159_v24 = vmul.f32 %v2672_v20, %v157_v19 }
 0x18f   :  { %v169_v27 = vadd.f32 %v3116_v25, %v159_v24 }
 0x190   :  { %v2674_v28 = vpop.eup %2673 }
 0x191   :  { %v2676_v31 = vpop.eup %2675  ;;  %v160_v33 = vmul.f32 %v2674_v28, %v158_v26  ;;  %2426 = vmatprep.mubr.msk.f32.mxu0 %vm116_vm0, %v169_v27 }
 0x192   :  { %v211_v34 = vmul.f32 %v2676_v31, %v3045_v21 }
 0x193   :  { %v170_v35 = vadd.f32 %v3114_v22, %v160_v33 }
 0x194   :  { %v2678_v36 = vpop.eup %2677  ;;  %v221_v37 = vadd.f32 %v216_v23, %v211_v34 }
 0x195   :  { %2427 = vmatmul.mubr.msk.f32.vlgmr.msra.gmra.mrb[0].mxu0 %vm116_vm0, %v170_v35  ;;  %v212_v38 = vmul.f32 %v2678_v36, %v3054_v29 }
 0x196   :  { %2591 = vmatpush3.bf16.msra.mxu0 %v3088_v42  ;;  %2437 = vmatprep.mubr.msk.f32.mxu0 %vm116_vm0, %v221_v37 }
 0x197   :  { %2593 = vmatprep.subr.bf16.mxu0 %v2592_v32  ;;  %v222_v40 = vadd.f32 %v218_v39, %v212_v38 }
 0x19a   :  { %2595 = vmatpush3.bf16.msra.mxu0 %v2592_v32 }
 0x19b   :  { %2597 = vmatprep.subr.bf16.mxu0 %v2596_v56 }
 0x19d   :  { %2438 = vmatmul.mubr.msk.f32.vlgmr.msra.gmra.mrb[2].mxu0 %vm116_vm0, %v222_v40 }
 0x19e   :  { %2599 = vmatpush3.bf16.msra.mxu0 %v2596_v56 }
 0x1a7   :  { %v226_v21 = vpop.xlane.xlu0 %225 }
 0x1a8   :  { %v231_v41 = vmul.f32 0.0625, %v226_v21 }
 0x1aa   :  { %v233_v46 = vsub.f32 %v3093_v43, %v231_v41  ;;  %v2863_v43 = vmov 0.0  }
 0x1ab   :  { %2447 = vmatprep.subr.mxu0 %v2863_v43  ;;  %2457 = vmatprep.subr.mxu1 %v2863_v43 }
 0x1ac   :  { %v235_v48 = vmul.f32 %v233_v46, %v233_v46  ;;  %v264_v42 = vmul.f32 %v233_v46, %v114_v44  ;;  %2459 = vmatprep.mubr.msk.f32.mxu1 %vm2864_vm10, %v2863_v43 }
 0x1ae   :  { %v237_v49 = vsel %vm223_vm1, %v235_v48, 0.0 }
 0x1af   :  { %238 = vadd.xlane.f32.xlu0 %v237_v49 }
 0x1b3   :  { %v229_v29 = vpop.xlane.xlu1 %228 }
 0x1b4   :  { %v232_v50 = vmul.f32 0.0625, %v229_v29 }
 0x1b6   :  { %v234_v51 = vsub.f32 %v3101_v45, %v232_v50 }
 0x1b7   :  { %v273_v17 = vpop.permute.xlu1 %272 }
 0x1b8   :  { %v236_v52 = vmul.f32 %v234_v51, %v234_v51  ;;  %v265_v15 = vmul.f32 %v234_v51, %v3108_v47 }
 0x1ba   :  { %v240_v53 = vsel %vm223_vm1, %v236_v52, 0.0 }
 0x1bb   :  { %241 = vadd.xlane.f32.xlu0 %v240_v53 }
 0x1d1   :  { %270 = vrot.lane.b32.xlu0 %v114_v44, %s2862_s22 }
 0x23c   :  { %v239_v45 = vpop.xlane.xlu0 %238 }
 0x23d   :  { %v244_v57 = vmul.f32 0.06666667, %v239_v45 }
 0x23f   :  { %2679 = vrsqrt.f32 %v244_v57  ;;  %vm248_vm11 = vcmp.eq.f32.partialorder %v244_v57, inf  ;;  %v251_v60 = vand.u32 2147483648, %v244_v57  ;;  %vm250_vm12 = vcmp.eq.f32.partialorder %v244_v57, 0.0 }
 0x248   :  { %v242_v58 = vpop.xlane.xlu0 %241 }
 0x249   :  { %v2680_v59 = vpop.eup %2679  ;;  %v245_v61 = vmul.f32 0.06666667, %v242_v58 }
 0x24a   :  { %v247_v62 = vmul.f32 %v2680_v59, %v244_v57 }
 0x24b   :  { %2681 = vrsqrt.f32 %v245_v61  ;;  %vm255_vm13 = vcmp.eq.f32.partialorder %v245_v61, inf  ;;  %v258_v6 = vand.u32 2147483648, %v245_v61  ;;  %vm257_vm14 = vcmp.eq.f32.partialorder %v245_v61, 0.0 }
 0x24c   :  { %v249_v63 = vsel %vm248_vm11, %v244_v57, %v247_v62  ;;  %v271_v10 = vpop.permute.xlu0 %270 }
 0x24d   :  { %v252_v1 = vsel %vm250_vm12, %v251_v60, %v249_v63 }
 0x24e   :  { %v260_v3 = vadd.f32 1e-06, %v252_v1 }
 0x250   :  { %2683 = vrcp.f32 %v260_v3 }
 0x255   :  { %v2682_v4 = vpop.eup %2681 }
 0x256   :  { %v254_v5 = vmul.f32 %v2682_v4, %v245_v61 }
 0x258   :  { %v256_v7 = vsel %vm255_vm13, %v245_v61, %v254_v5 }
 0x259   :  { %v259_v8 = vsel %vm257_vm14, %v258_v6, %v256_v7 }
 0x25a   :  { %v2684_v9 = vpop.eup %2683  ;;  %v261_v11 = vadd.f32 1e-06, %v259_v8 }
 0x25b   :  { %v266_v13 = vmul.f32 %v2684_v9, %v264_v42 }
 0x25c   :  { %2685 = vrcp.f32 %v261_v11 }
 0x25d   :  { %v276_v14 = vadd.f32 %v271_v10, %v266_v13 }
 0x25f   :  { %2444 = vmatprep.mubr.msk.f32.mxu0 %vm223_vm1, %v276_v14 }
 0x266   :  { %v2686_v16 = vpop.eup %2685 }
 0x267   :  { %v267_v18 = vmul.f32 %v2686_v16, %v265_v15 }
 0x268   :  { %v3149_v19 = vpop.f32.mrb[0].mxu0 }
 0x269   :  { %v277_v20 = vadd.f32 %v273_v17, %v267_v18  ;;  %v3151_v24 = vpop.f32.mrb[1].mxu0 }
 0x26b   :  { %2445 = vmatmul.mubr.msk.f32.vlgmr.msra.gmra.mrb[4].mxu0 %vm223_vm1, %v277_v20 }
 0x26c   :  { %2449 = vmatprep.mubr.msk.f32.mxu0 %vm2864_vm10, %v2863_v43 }
 0x270   :  { %v3156_v26 = vpop.f32.mrb[2].mxu0 }
 0x271   :  { %v3158_v27 = vpop.f32.mrb[3].mxu0 }
 0x272   :  { %2448 = vmatpush3.xpose.msk.msra.mxu0 %vm531_vm15, %v3158_v27 }
 0x273   :  { %2452 = vmatprep.subr.mxu0 %v2863_v43 }
 0x275   :  { %2450 = vmatmul.mubr.msk.f32.vlgmr.msra.gmra.mrb[6].mxu0 %vm531_vm15, %v3151_v24 }
 0x276   :  { %2453 = vmatpush3.xpose.msk.msra.mxu0 %vm531_vm15, %v3156_v26  ;;  %2454 = vmatprep.mubr.msk.f32.mxu0 %vm2864_vm10, %v2863_v43 }
 0x277   :  { %2462 = vmatprep.subr.mxu0 %v2863_v43 }
 0x279   :  { %2455 = vmatmul.mubr.msk.f32.vlgmr.msra.gmra.mrb[8].mxu0 %vm531_vm15, %v3149_v19 }
 0x27a   :  { %2464 = vmatprep.mubr.msk.f32.mxu0 %vm2864_vm10, %v2863_v43 }
 0x33e   :  { %v3174_v47 = vpop.f32.mrb[4].mxu0 }
 0x33f   :  { %v3176_v28 = vpop.f32.mrb[5].mxu0  ;;  %2463 = vmatpush3.msra.mxu0 %v3174_v47 }
 0x340   :  { %2458 = vmatpush3.msra.mxu1 %v3176_v28  ;;  %2472 = vmatprep.subr.mxu0 %v2863_v43 }
 0x341   :  { %2467 = vmatprep.subr.mxu1 %v2863_v43 }
 0x348   :  { %v604_v30 = vpop.f32.mrb[6].mxu0 }
 0x349   :  { %v684_v12 = vmul.f32 0.35355338, %v604_v30  ;;  %v2451_v31 = vpop.f32.mrb[7].mxu0 }
 0x34b   :  { %v686_v33 = vsel %vm531_vm15, %v684_v12, -inf }
 0x34c   :  { %687 = vmax.xlane.f32.xlu1 %v686_v33  ;;  %v680_v34 = vpop.f32.mrb[8].mxu0 }
 0x34d   :  { %v685_v35 = vmul.f32 0.35355338, %v680_v34  ;;  %v2456_v23 = vpop.f32.mrb[9].mxu0 }
 0x34f   :  { %v689_v32 = vsel %vm531_vm15, %v685_v35, -inf }
 0x350   :  { %690 = vmax.xlane.f32.xlu0 %v689_v32 }
 0x35d   :  { %937 = vrot.lane.b32.xlu1 %v3156_v26, %s2865_s5 }
 0x361   :  { %857 = vrot.lane.b32.xlu1 %v3151_v24, %s2865_s5 }
 0x3d9   :  { %v688_v36 = vpop.xlane.xlu1 %687 }
 0x3da   :  { %v692_v37 = vsub.f32 %v684_v12, %v688_v36 }
 0x3dc   :  { %v694_v38 = vmul.f32 1.442695, %v692_v37 }
 0x3dd   :  { %v691_v39 = vpop.xlane.xlu0 %690  ;;  %v938_v42 = vpop.permute.xlu1 %937 }
 0x3de   :  { %2687 = vpow2.f32 %v694_v38  ;;  %v693_v40 = vsub.f32 %v685_v35, %v691_v39 }
 0x3e0   :  { %v696_v21 = vmul.f32 1.442695, %v693_v40 }
 0x3e1   :  { %v858_v49 = vpop.permute.xlu1 %857 }
 0x3e2   :  { %2689 = vpow2.f32 %v696_v21 }
 0x3e8   :  { %v2688_v41 = vpop.eup %2687 }
 0x3e9   :  { %v698_v44 = vsel %vm531_vm15, %v2688_v41, 0.0 }
 0x3ea   :  { %699 = vadd.xlane.f32.xlu0 %v698_v44 }
 0x3ec   :  { %v2690_v46 = vpop.eup %2689 }
 0x3ed   :  { %v701_v48 = vsel %vm531_vm15, %v2690_v46, 0.0 }
 0x3ee   :  { %702 = vadd.xlane.f32.xlu1 %v701_v48 }
 0x3ff   :  { %935 = vrot.lane.b32.xlu1 %v3149_v19, %s2865_s5 }
 0x400   :  { %859 = vrot.lane.b32.xlu0 %v3158_v27, %s2865_s5 }
 0x477   :  { %v700_v29 = vpop.xlane.xlu0 %699 }
 0x478   :  { %2691 = vrcp.f32 %v700_v29 }
 0x47b   :  { %v703_v50 = vpop.xlane.xlu1 %702  ;;  %v860_v53 = vpop.permute.xlu0 %859 }
 0x47c   :  { %2693 = vrcp.f32 %v703_v50 }
 0x47f   :  { %v936_v56 = vpop.permute.xlu1 %935 }
 0x482   :  { %v2692_v51 = vpop.eup %2691 }
 0x483   :  { %v705_v52 = vmul.f32 %v2692_v51, %v2688_v41 }
 0x485   :  { %2460 = vmatmul.mubr.msk.f32.vlgmr.msra.gmra.mrb[0].mxu1 %vm531_vm15, %v705_v52 }
 0x486   :  { %v2694_v54 = vpop.eup %2693  ;;  %2468 = vmatpush3.xpose.msk.msra.mxu1 %vm531_vm15, %v860_v53  ;;  %2469 = vmatprep.mubr.msk.f32.mxu1 %vm2864_vm10, %v2863_v43 }
 0x487   :  { %v707_v55 = vmul.f32 %v2694_v54, %v2690_v46  ;;  %2477 = vmatprep.subr.mxu1 %v2863_v43 }
 0x489   :  { %2465 = vmatmul.mubr.msk.f32.vlgmr.msra.gmra.mrb[10].mxu0 %vm531_vm15, %v707_v55  ;;  %2470 = vmatmul.mubr.msk.f32.vlgmr.msra.gmra.mrb[2].mxu1 %vm531_vm15, %v858_v49 }
 0x48a   :  { %2473 = vmatpush3.xpose.msk.msra.mxu0 %vm531_vm15, %v938_v42  ;;  %2474 = vmatprep.mubr.msk.f32.mxu0 %vm2864_vm10, %v2863_v43 }
 0x48b   :  { %2482 = vmatprep.subr.mxu0 %v2863_v43  ;;  %2479 = vmatprep.mubr.msk.f32.mxu1 %vm2864_vm10, %v2863_v43 }
 0x48d   :  { %2475 = vmatmul.mubr.msk.f32.vlgmr.msra.gmra.mrb[12].mxu0 %vm531_vm15, %v936_v56 }
 0x48e   :  { %2484 = vmatprep.mubr.msk.f32.mxu0 %vm2864_vm10, %v2863_v43 }
 0x558   :  { %v777_v45 = vpop.f32.mrb[0].mxu1 }
 0x559   :  { %855 = vst.msk [vmem:[#allocation2] sm:$0xff] %vm854_vm2, %v777_v45  ;;  %v2461_v57 = vpop.f32.mrb[1].mxu1 }
 0x55c   :  { %v850_v58 = vpop.f32.mrb[10].mxu0  ;;  %v931_v59 = vpop.f32.mrb[2].mxu1 }
 0x55d   :  { %856 = vst.msk [vmem:[#allocation2 + $0x8] sm:$0xff] %vm854_vm2, %v850_v58  ;;  %v1013_v60 = vmul.f32 0.35355338, %v931_v59  ;;  %v2466_v61 = vpop.f32.mrb[11].mxu0  ;;  %v2471_v62 = vpop.f32.mrb[3].mxu1 }
 0x55f   :  { %v1015_v63 = vsel %vm531_vm15, %v1013_v60, -inf }
 0x560   :  { %1016 = vmax.xlane.f32.xlu0 %v1015_v63  ;;  %v1009_v1 = vpop.f32.mrb[12].mxu0 }
 0x561   :  { %v1014_v3 = vmul.f32 0.35355338, %v1009_v1  ;;  %v2476_v4 = vpop.f32.mrb[13].mxu0 }
 0x563   :  { %v1018_v5 = vsel %vm531_vm15, %v1014_v3, -inf }
 0x564   :  { %1019 = vmax.xlane.f32.xlu1 %v1018_v5 }
 0x575   :  { %1115 = vrot.lane.b32.xlu1 %v3174_v47, %s2866_s27 }
 0x576   :  { %1038 = vrot.lane.b32.xlu0 %v3176_v28, %s2866_s27 }
 0x579   :  { %1204 = vrot.lane.b32.xlu1 %v3158_v27, %s2862_s22 }
 0x57d   :  { %1282 = vrot.lane.b32.xlu1 %v3156_v26, %s2862_s22 }
 0x581   :  { %1280 = vrot.lane.b32.xlu1 %v3149_v19, %s2862_s22 }
 0x5ed   :  { %v1017_v6 = vpop.xlane.xlu0 %1016 }
 0x5ee   :  { %v1021_v7 = vsub.f32 %v1013_v60, %v1017_v6 }
 0x5f0   :  { %v1023_v8 = vmul.f32 1.442695, %v1021_v7 }
 0x5f1   :  { %v1039_v9 = vpop.permute.xlu0 %1038  ;;  %v1020_v10 = vpop.xlane.xlu1 %1019 }
 0x5f2   :  { %2695 = vpow2.f32 %v1023_v8  ;;  %v1022_v11 = vsub.f32 %v1014_v3, %v1020_v10  ;;  %2478 = vmatpush3.msra.mxu1 %v1039_v9 }
 0x5f3   :  { %2487 = vmatprep.subr.mxu1 %v2863_v43 }
 0x5f4   :  { %v1025_v13 = vmul.f32 1.442695, %v1022_v11 }
 0x5f5   :  { %v1116_v14 = vpop.permute.xlu1 %1115 }
 0x5f6   :  { %2697 = vpow2.f32 %v1025_v13  ;;  %2483 = vmatpush3.msra.mxu0 %v1116_v14 }
 0x5f7   :  { %2492 = vmatprep.subr.mxu0 %v2863_v43 }
 0x5f9   :  { %v1205_v12 = vpop.permute.xlu1 %1204 }
 0x5fc   :  { %v2696_v15 = vpop.eup %2695 }
 0x5fd   :  { %v1027_v16 = vsel %vm531_vm15, %v2696_v15, 0.0  ;;  %v1283_v35 = vpop.permute.xlu1 %1282 }
 0x5fe   :  { %1028 = vadd.xlane.f32.xlu0 %v1027_v16 }
 0x600   :  { %v2698_v17 = vpop.eup %2697 }
 0x601   :  { %v1030_v18 = vsel %vm531_vm15, %v2698_v17, 0.0  ;;  %v1281_v36 = vpop.permute.xlu1 %1280 }
 0x602   :  { %1031 = vadd.xlane.f32.xlu0 %v1030_v18 }
 0x618   :  { %1202 = vrot.lane.b32.xlu0 %v3151_v24, %s2862_s22 }
 0x68b   :  { %v1029_v20 = vpop.xlane.xlu0 %1028 }
 0x68c   :  { %2699 = vrcp.f32 %v1029_v20 }
 0x68f   :  { %v1032_v30 = vpop.xlane.xlu0 %1031 }
 0x690   :  { %2701 = vrcp.f32 %v1032_v30 }
 0x693   :  { %v1203_v32 = vpop.permute.xlu0 %1202 }
 0x696   :  { %v2700_v31 = vpop.eup %2699 }
 0x697   :  { %v1034_v33 = vmul.f32 %v2700_v31, %v2696_v15 }
 0x699   :  { %2480 = vmatmul.mubr.msk.f32.vlgmr.msra.gmra.mrb[4].mxu1 %vm531_vm15, %v1034_v33 }
 0x69a   :  { %v2702_v34 = vpop.eup %2701  ;;  %2488 = vmatpush3.xpose.msk.msra.mxu1 %vm531_vm15, %v1205_v12  ;;  %2489 = vmatprep.mubr.msk.f32.mxu1 %vm2864_vm10, %v2863_v43 }
 0x69b   :  { %v1036_v23 = vmul.f32 %v2702_v34, %v2698_v17  ;;  %2497 = vmatprep.subr.mxu1 %v2863_v43 }
 0x69d   :  { %2485 = vmatmul.mubr.msk.f32.vlgmr.msra.gmra.mrb[14].mxu0 %vm531_vm15, %v1036_v23  ;;  %2490 = vmatmul.mubr.msk.f32.vlgmr.msra.gmra.mrb[6].mxu1 %vm531_vm15, %v1203_v32 }
 0x69e   :  { %2493 = vmatpush3.xpose.msk.msra.mxu0 %vm531_vm15, %v1283_v35  ;;  %2494 = vmatprep.mubr.msk.f32.mxu0 %vm2864_vm10, %v2863_v43 }
 0x69f   :  { %2502 = vmatprep.subr.mxu0 %v2863_v43  ;;  %2499 = vmatprep.mubr.msk.f32.mxu1 %vm2864_vm10, %v2863_v43 }
 0x6a1   :  { %2495 = vmatmul.mubr.msk.f32.vlgmr.msra.gmra.mrb[16].mxu0 %vm531_vm15, %v1281_v36 }
 0x6a2   :  { %2504 = vmatprep.mubr.msk.f32.mxu0 %vm2864_vm10, %v2863_v43 }
 0x76c   :  { %v3242_v37 = vpop.f32.mrb[4].mxu1 }
 0x76d   :  { %v2481_v38 = vpop.f32.mrb[5].mxu1 }
 0x770   :  { %v3244_v39 = vpop.f32.mrb[14].mxu0  ;;  %v1276_v40 = vpop.f32.mrb[6].mxu1 }
 0x771   :  { %v1358_v21 = vmul.f32 0.35355338, %v1276_v40  ;;  %v2486_v41 = vpop.f32.mrb[15].mxu0  ;;  %v2491_v44 = vpop.f32.mrb[7].mxu1 }
 0x773   :  { %v1360_v46 = vsel %vm531_vm15, %v1358_v21, -inf }
 0x774   :  { %1361 = vmax.xlane.f32.xlu0 %v1360_v46  ;;  %v1354_v48 = vpop.f32.mrb[16].mxu0 }
 0x775   :  { %v1359_v42 = vmul.f32 0.35355338, %v1354_v48  ;;  %v2496_v49 = vpop.f32.mrb[17].mxu0 }
 0x777   :  { %v1363_v29 = vsel %vm531_vm15, %v1359_v42, -inf }
 0x778   :  { %1364 = vmax.xlane.f32.xlu1 %v1363_v29 }
 0x789   :  { %1458 = vrot.lane.b32.xlu1 %v3174_v47, %s2865_s5 }
 0x78a   :  { %1382 = vrot.lane.b32.xlu0 %v3176_v28, %s2865_s5 }
 0x78d   :  { %1547 = vrot.lane.b32.xlu1 %v3158_v27, %s2867_s9 }
 0x791   :  { %1625 = vrot.lane.b32.xlu1 %v3156_v26, %s2867_s9 }
 0x795   :  { %1623 = vrot.lane.b32.xlu1 %v3149_v19, %s2867_s9 }
 0x801   :  { %v1362_v50 = vpop.xlane.xlu0 %1361 }
 0x802   :  { %v1366_v51 = vsub.f32 %v1358_v21, %v1362_v50 }
 0x804   :  { %v1368_v52 = vmul.f32 1.442695, %v1366_v51 }
 0x805   :  { %v1383_v53 = vpop.permute.xlu0 %1382  ;;  %v1365_v54 = vpop.xlane.xlu1 %1364 }
 0x806   :  { %2703 = vpow2.f32 %v1368_v52  ;;  %v1367_v55 = vsub.f32 %v1359_v42, %v1365_v54  ;;  %2498 = vmatpush3.msra.mxu1 %v1383_v53  ;;  %v1891_v42 = vld [vmem:[#allocation8 + $0x8] sm:$0xff] }
 0x807   :  { %2507 = vmatprep.subr.mxu1 %v2863_v43 }
 0x808   :  { %v1370_v56 = vmul.f32 1.442695, %v1367_v55 }
 0x809   :  { %v1459_v45 = vpop.permute.xlu1 %1458 }
 0x80a   :  { %2705 = vpow2.f32 %v1370_v56  ;;  %2503 = vmatpush3.msra.mxu0 %v1459_v45  ;;  %v2335_v45 = vld [vmem:[%s3415_s10] ss:$0 sm:$0xff]  ;;  %s2871_s10 = smov 64  }
 0x80b   :  { %2512 = vmatprep.subr.mxu0 %v2863_v43 }
 0x80d   :  { %v1548_v60 = vpop.permute.xlu1 %1547 }
 0x810   :  { %v2704_v27 = vpop.eup %2703 }
 0x811   :  { %v1372_v26 = vsel %vm531_vm15, %v2704_v27, 0.0  ;;  %v1626_v1 = vpop.permute.xlu1 %1625 }
 0x812   :  { %1373 = vadd.xlane.f32.xlu0 %v1372_v26 }
 0x814   :  { %v2706_v19 = vpop.eup %2705 }
 0x815   :  { %v1375_v57 = vsel %vm531_vm15, %v2706_v19, 0.0  ;;  %v1624_v4 = vpop.permute.xlu1 %1623 }
 0x816   :  { %1376 = vadd.xlane.f32.xlu0 %v1375_v57 }
 0x82c   :  { %1545 = vrot.lane.b32.xlu0 %v3151_v24, %s2867_s9  ;;  %s2873_s9 = smov [#allocation11]  }
 0x89f   :  { %v1374_v58 = vpop.xlane.xlu0 %1373 }
 0x8a0   :  { %2707 = vrcp.f32 %v1374_v58 }
 0x8a3   :  { %v1377_v59 = vpop.xlane.xlu0 %1376 }
 0x8a4   :  { %2709 = vrcp.f32 %v1377_v59 }
 0x8a7   :  { %v1546_v24 = vpop.permute.xlu0 %1545 }
 0x8aa   :  { %v2708_v61 = vpop.eup %2707 }
 0x8ab   :  { %v1379_v62 = vmul.f32 %v2708_v61, %v2704_v27 }
 0x8ad   :  { %2500 = vmatmul.mubr.msk.f32.vlgmr.msra.gmra.mrb[8].mxu1 %vm531_vm15, %v1379_v62 }
 0x8ae   :  { %v2710_v63 = vpop.eup %2709  ;;  %2508 = vmatpush3.xpose.msk.msra.mxu1 %vm531_vm15, %v1548_v60  ;;  %2509 = vmatprep.mubr.msk.f32.mxu1 %vm2864_vm10, %v2863_v43 }
 0x8af   :  { %v1381_v3 = vmul.f32 %v2710_v63, %v2706_v19  ;;  %2517 = vmatprep.subr.mxu1 %v2863_v43 }
 0x8b1   :  { %2505 = vmatmul.mubr.msk.f32.vlgmr.msra.gmra.mrb[18].mxu0 %vm531_vm15, %v1381_v3  ;;  %2510 = vmatmul.mubr.msk.f32.vlgmr.msra.gmra.mrb[10].mxu1 %vm531_vm15, %v1546_v24 }
 0x8b2   :  { %2513 = vmatpush3.xpose.msk.msra.mxu0 %vm531_vm15, %v1626_v1  ;;  %2514 = vmatprep.mubr.msk.f32.mxu0 %vm2864_vm10, %v2863_v43 }
 0x8b3   :  { %2522 = vmatprep.subr.mxu0 %v2863_v43  ;;  %2519 = vmatprep.mubr.msk.f32.mxu1 %vm2864_vm10, %v2863_v43 }
 0x8b5   :  { %2515 = vmatmul.mubr.msk.f32.vlgmr.msra.gmra.mrb[20].mxu0 %vm531_vm15, %v1624_v4 }
 0x8b6   :  { %2524 = vmatprep.mubr.msk.f32.mxu0 %vm2864_vm10, %v2863_v43 }
 0x980   :  { %v1454_v5 = vpop.f32.mrb[8].mxu1 }
 0x981   :  { %v2501_v6 = vpop.f32.mrb[9].mxu1 }
 0x984   :  { %v1530_v7 = vpop.f32.mrb[18].mxu0  ;;  %v1619_v8 = vpop.f32.mrb[10].mxu1 }
 0x985   :  { %v1701_v9 = vmul.f32 0.35355338, %v1619_v8  ;;  %v2506_v10 = vpop.f32.mrb[19].mxu0  ;;  %v2511_v11 = vpop.f32.mrb[11].mxu1  ;;  %v2035_v8 = vld [vmem:[%s3416_s11 + $0x8] sm:$0xff] }
 0x987   :  { %v1703_v13 = vsel %vm531_vm15, %v1701_v9, -inf }
 0x988   :  { %1704 = vmax.xlane.f32.xlu0 %v1703_v13  ;;  %v1697_v14 = vpop.f32.mrb[20].mxu0 }
 0x989   :  { %v1702_v15 = vmul.f32 0.35355338, %v1697_v14  ;;  %v2516_v16 = vpop.f32.mrb[21].mxu0 }
 0x98b   :  { %v1706_v17 = vsel %vm531_vm15, %v1702_v15, -inf }
 0x98c   :  { %1707 = vmax.xlane.f32.xlu1 %v1706_v17 }
 0x99d   :  { %1801 = vrot.lane.b32.xlu1 %v3174_v47, %s2868_s17 }
 0x9a1   :  { %1193 = vrot.lane.b32.xlu1 %v3242_v37, %s2869_s28 }
 0x9a5   :  { %1195 = vrot.lane.b32.xlu1 %v3244_v39, %s2869_s28 }
 0x9a9   :  { %1538 = vrot.lane.b32.xlu1 %v1530_v7, %s2858_s16  ;;  %v2034_v7 = vld [vmem:[%s3416_s11] sm:$0xff] }
 0xa15   :  { %v1705_v43 = vpop.xlane.xlu0 %1704 }
 0xa16   :  { %v1709_v18 = vsub.f32 %v1701_v9, %v1705_v43  ;;  %v2604_v9 = vpack.c.bf16 %v2035_v8, %v2034_v7 }
 0xa18   :  { %v1711_v20 = vmul.f32 1.442695, %v1709_v18 }
 0xa19   :  { %v1708_v30 = vpop.xlane.xlu1 %1707 }
 0xa1a   :  { %2711 = vpow2.f32 %v1711_v20  ;;  %v1710_v12 = vsub.f32 %v1702_v15, %v1708_v30 }
 0xa1c   :  { %v1713_v31 = vmul.f32 1.442695, %v1710_v12 }
 0xa1d   :  { %v1802_v33 = vpop.permute.xlu1 %1801 }
 0xa1e   :  { %2713 = vpow2.f32 %v1713_v31  ;;  %2523 = vmatpush3.msra.mxu0 %v1802_v33 }
 0xa1f   :  { %2605 = vmatprep.subr.bf16.mxu0 %v2604_v9 }
 0xa21   :  { %v1194_v34 = vpop.permute.xlu1 %1193 }
 0xa22   :  { %1200 = vst.msk [vmem:[#allocation2] sm:$0xff] %vm1199_vm3, %v1194_v34  ;;  %v2036_v34 = vld [vmem:[%s3416_s11 + $0x10] sm:$0xff] }
 0xa24   :  { %v2712_v47 = vpop.eup %2711 }
 0xa25   :  { %v1196_v35 = vpop.permute.xlu1 %1195  ;;  %v1715_v23 = vsel %vm531_vm15, %v2712_v47, 0.0 }
 0xa26   :  { %1201 = vst.msk [vmem:[#allocation2 + $0x8] sm:$0xff] %vm1199_vm3, %v1196_v35  ;;  %1716 = vadd.xlane.f32.xlu0 %v1715_v23 }
 0xa28   :  { %v2714_v32 = vpop.eup %2713 }
 0xa29   :  { %v1539_v36 = vpop.permute.xlu1 %1538  ;;  %v1718_v37 = vsel %vm531_vm15, %v2714_v32, 0.0 }
 0xa2a   :  { %1544 = vst.msk [vmem:[#allocation2 + $0x8] sm:$0xff] %vm1542_vm4, %v1539_v36  ;;  %1719 = vadd.xlane.f32.xlu0 %v1718_v37  ;;  %v2735_v37 = vld [vmem:[%s3408_s3] sm:$0xff] }
 0xa40   :  { %1725 = vrot.lane.b32.xlu0 %v3176_v28, %s2868_s17  ;;  %v1890_v28 = vld [vmem:[#allocation8] sm:$0xff]  ;;  %s2291_s17 = sshll.u32 %s2873_s9, 4  ;;  %s2292_s17 = int_to_ptr.vmem [resolvable:$true] %s2291_s17 }
 0xa41   :  { %v2600_v49 = vpack.c.bf16 %v1891_v42, %v1890_v28  ;;  %s2825_s28 = scalar_lea.vmem %s2292_s17, 256  ;;  %p2830_p5 = scmp.lt.s32.totalorder %s2292_s17, %s2292_s17 }
 0xa42   :  { %p2826_p4 = scmp.ne.s32.totalorder %s2292_s17, %s2825_s28  ;;  %p2831_p6 = scmp.lt.s32.totalorder %s2825_s28, %s2825_s28 }
 0xa44   :  { %1536 = vrot.lane.b32.xlu0 %v1454_v5, %s2858_s16  ;;  %p2832_p7 = por %p2831_p6, %p2830_p5 }
 0xa46   :  { %p2833_p8 = pnand %p2832_p7, %p2826_p4 }
 0xab3   :  { %v1717_v38 = vpop.xlane.xlu0 %1716 }
 0xab4   :  { %2715 = vrcp.f32 %v1717_v38 }
 0xab7   :  { %v1720_v39 = vpop.xlane.xlu0 %1719 }
 0xab8   :  { %2717 = vrcp.f32 %v1720_v39 }
 0xabb   :  { %v1726_v40 = vpop.permute.xlu0 %1725 }
 0xabc   :  { %2518 = vmatpush3.msra.mxu1 %v1726_v40 }
 0xabd   :  { %2601 = vmatprep.subr.bf16.mxu1 %v2600_v49 }
 0xabe   :  { %v2716_v21 = vpop.eup %2715 }
 0xabf   :  { %v1722_v41 = vmul.f32 %v2716_v21, %v2712_v47  ;;  %v1537_v44 = vpop.permute.xlu0 %1536  ;;  %v2037_v47 = vld [vmem:[%s3416_s11 + $0x18] sm:$0xff] }
 0xac0   :  { %1543 = vst.msk [vmem:[#allocation2] sm:$0xff] %vm1542_vm4, %v1537_v44  ;;  %v2608_v23 = vpack.c.bf16 %v2037_v47, %v2036_v34 }
 0xac1   :  { %2520 = vmatmul.mubr.msk.f32.vlgmr.msra.gmra.mrb[12].mxu1 %vm531_vm15, %v1722_v41  ;;  %v2736_v41 = vld [vmem:[%s3408_s3 + $0x8] sm:$0xff] }
 0xac2   :  { %v2718_v46 = vpop.eup %2717  ;;  %2603 = vmatpush3.bf16.msra.mxu1 %v2600_v49 }
 0xac3   :  { %v1724_v48 = vmul.f32 %v2718_v46, %v2714_v32 }
 0xac5   :  { %2525 = vmatmul.mubr.msk.f32.vlgmr.msra.gmra.mrb[22].mxu0 %vm531_vm15, %v1724_v48 }
 0xac6   :  { %2607 = vmatpush3.bf16.msra.mxu0 %v2604_v9 }
 0xac7   :  { %2609 = vmatprep.subr.bf16.mxu0 %v2608_v23 }
 0xaca   :  { %2611 = vmatpush3.bf16.msra.mxu0 %v2608_v23 }
 0xb94   :  { %v1797_v29 = vpop.f32.mrb[12].mxu1 }
 0xb95   :  { %1879 = vrot.lane.b32.xlu0 %v1797_v29, %s2870_s4  ;;  %v2521_v50 = vpop.f32.mrb[13].mxu1 }
 0xb96   :  { %v2184_v50 = vld [vmem:[%s3418_s13] sm:$0xff] }
 0xb98   :  { %v1873_v51 = vpop.f32.mrb[22].mxu0 }
 0xb99   :  { %1881 = vrot.lane.b32.xlu1 %v1873_v51, %s2870_s4  ;;  %v2526_v52 = vpop.f32.mrb[23].mxu0 }
 0xb9a   :  { %v2187_v52 = vld [vmem:[%s3418_s13 + $0x18] sm:$0xff] }
 0xc07   :  { %v1880_v53 = vpop.permute.xlu0 %1879 }
 0xc08   :  { %1886 = vst.msk [vmem:[#allocation2] sm:$0xff] %vm1885_vm5, %v1880_v53 }
 0xc0b   :  { %v1882_v54 = vpop.permute.xlu1 %1881 }
 0xc0c   :  { %1887 = vst.msk [vmem:[#allocation2 + $0x8] sm:$0xff] %vm1885_vm5, %v1882_v54  ;;  %v2188_v54 = vld [vmem:[%s3418_s13 + $0x20] sm:$0xff] }
 0xc0f   :  { %v1888_v55 = vld [vmem:[#allocation2] sm:$0xff] }
 0xc10   :  { %2531 = vmatprep.mubr.msk.f32.mxu1 %vm223_vm1, %v1888_v55  ;;  %v2189_v55 = vld [vmem:[%s3418_s13 + $0x28] sm:$0xff] }
 0xc13   :  { %v1889_v56 = vld [vmem:[#allocation2 + $0x8] sm:$0xff] }
 0xc14   :  { %2532 = vmatmul.mubr.msk.f32.vlgmr.msra.gmra.mrb[14].mxu1 %vm223_vm1, %v1889_v56  ;;  %v2620_v56 = vpack.c.bf16 %v2189_v55, %v2188_v54  ;;  %v2872_v54 = vmov -1.0  }
 0xce7   :  { %v2533_v27 = vpop.f32.mrb[14].mxu1 }
 0xce8   :  { %v1977_v26 = vadd.f32 %v2533_v27, %v2335_v45  ;;  %v1971_v19 = vpop.f32.mrb[15].mxu1  ;;  %v2191_v27 = vld [vmem:[%s3418_s13 + $0x38] sm:$0xff] }
 0xce9   :  { %v1972_v57 = vadd.f32 %v2335_v45, %v1971_v19  ;;  %v2190_v45 = vld [vmem:[%s3418_s13 + $0x30] sm:$0xff]  ;;  %v2192_v19 = vld [vmem:[%s3418_s13 + $0x40] sm:$0xff] }
 0xcea   :  { %v3296_v58 = vadd.f32 %v1977_v26, %v3029_v2  ;;  %v2624_v26 = vpack.c.bf16 %v2191_v27, %v2190_v45 }
 0xceb   :  { %v3299_v59 = vadd.f32 %v1972_v57, %v3021_v0  ;;  %v2193_v57 = vld [vmem:[%s3418_s13 + $0x48] sm:$0xff] }
 0xcec   :  { %v1985_v60 = vsel %vm116_vm0, %v3296_v58, 0.0 }
 0xced   :  { %1986 = vadd.xlane.f32.xlu1 %v1985_v60  ;;  %v1982_v61 = vsel %vm116_vm0, %v3299_v59, 0.0  ;;  %v2628_v60 = vpack.c.bf16 %v2193_v57, %v2192_v19 }
 0xcee   :  { %1983 = vadd.xlane.f32.xlu0 %v1982_v61  ;;  %v2194_v61 = vld [vmem:[%s3418_s13 + $0x50] sm:$0xff] }
 0xd7a   :  { %v1987_v62 = vpop.xlane.xlu1 %1986 }
 0xd7b   :  { %v1989_v63 = vmul.f32 0.03125, %v1987_v62  ;;  %v1984_v1 = vpop.xlane.xlu0 %1983  ;;  %v2195_v62 = vld [vmem:[%s3418_s13 + $0x58] sm:$0xff] }
 0xd7c   :  { %v1988_v3 = vmul.f32 0.03125, %v1984_v1  ;;  %v2196_v1 = vld [vmem:[%s3418_s13 + $0x60] sm:$0xff] }
 0xd7d   :  { %v1991_v24 = vsub.f32 %v3296_v58, %v1989_v63  ;;  %v2632_v63 = vpack.c.bf16 %v2195_v62, %v2194_v61 }
 0xd7e   :  { %v1990_v2 = vsub.f32 %v3299_v59, %v1988_v3  ;;  %v2197_v3 = vld [vmem:[%s3418_s13 + $0x68] sm:$0xff] }
 0xd7f   :  { %2024 = vrot.lane.b32.xlu1 %v1991_v24, %s2871_s10  ;;  %v1993_v5 = vmul.f32 %v1991_v24, %v1991_v24  ;;  %v2636_v24 = vpack.c.bf16 %v2197_v3, %v2196_v1  ;;  %v2341_v1 = vld [vmem:[%s3419_s14] ss:$0 sm:$0xff] }
 0xd80   :  { %v1992_v0 = vmul.f32 %v1990_v2, %v1990_v2 }
 0xd81   :  { %v1997_v6 = vsel %vm116_vm0, %v1993_v5, 0.0  ;;  %v2338_v5 = vld [vmem:[#allocation9] ss:$0 sm:$0xff] }
 0xd82   :  { %v1994_v4 = vsel %vm116_vm0, %v1992_v0, 0.0  ;;  %v2199_v0 = vld [vmem:[%s3418_s13 + $0x78] sm:$0xff] }
 0xd83   :  { %1995 = vadd.xlane.f32.xlu0 %v1994_v4 }
 0xd87   :  { %1998 = vadd.xlane.f32.xlu0 %v1997_v6 }
 0xd9d   :  { %2022 = vrot.lane.b32.xlu0 %v1990_v2, %s2871_s10  ;;  %v2198_v2 = vld [vmem:[%s3418_s13 + $0x70] sm:$0xff] }
 0xd9e   :  { %v2640_v4 = vpack.c.bf16 %v2199_v0, %v2198_v2 }
 0xdf1   :  { %v2025_v40 = vpop.permute.xlu1 %2024 }
 0xdf2   :  { %v2029_v44 = vmul.f32 %v2736_v41, %v2025_v40 }
 0xe10   :  { %v1996_v10 = vpop.xlane.xlu0 %1995 }
 0xe11   :  { %v2000_v11 = vmul.f32 0.032258064, %v1996_v10 }
 0xe13   :  { %2719 = vrsqrt.f32 %v2000_v11  ;;  %vm2004_vm1 = vcmp.eq.f32.partialorder %v2000_v11, inf  ;;  %v2007_v17 = vand.u32 2147483648, %v2000_v11  ;;  %vm2006_vm6 = vcmp.eq.f32.partialorder %v2000_v11, 0.0 }
 0xe14   :  { %v1999_v13 = vpop.xlane.xlu0 %1998 }
 0xe15   :  { %v2001_v14 = vmul.f32 0.032258064, %v1999_v13 }
 0xe17   :  { %2721 = vrsqrt.f32 %v2001_v14  ;;  %vm2011_vm7 = vcmp.eq.f32.partialorder %v2001_v14, inf  ;;  %v2014_v31 = vand.u32 2147483648, %v2001_v14  ;;  %vm2013_vm8 = vcmp.eq.f32.partialorder %v2001_v14, 0.0 }
 0xe18   :  { %v2023_v36 = vpop.permute.xlu0 %2022 }
 0xe19   :  { %v2028_v38 = vmul.f32 %v2735_v37, %v2023_v36 }
 0xe1d   :  { %v2720_v15 = vpop.eup %2719 }
 0xe1e   :  { %v2003_v16 = vmul.f32 %v2720_v15, %v2000_v11 }
 0xe20   :  { %v2005_v43 = vsel %vm2004_vm1, %v2000_v11, %v2003_v16 }
 0xe21   :  { %v2722_v18 = vpop.eup %2721  ;;  %v2008_v20 = vsel %vm2006_vm6, %v2007_v17, %v2005_v43 }
 0xe22   :  { %v2010_v30 = vmul.f32 %v2722_v18, %v2001_v14  ;;  %v2016_v12 = vadd.f32 1e-06, %v2008_v20 }
 0xe24   :  { %v2012_v33 = vsel %vm2011_vm7, %v2001_v14, %v2010_v30  ;;  %2723 = vrcp.f32 %v2016_v12 }
 0xe25   :  { %v2015_v35 = vsel %vm2013_vm8, %v2014_v31, %v2012_v33 }
 0xe26   :  { %v2017_v32 = vadd.f32 1e-06, %v2015_v35 }
 0xe28   :  { %2725 = vrcp.f32 %v2017_v32 }
 0xe2e   :  { %v2724_v39 = vpop.eup %2723 }
 0xe2f   :  { %v2030_v21 = vmul.f32 %v2724_v39, %v2028_v38 }
 0xe31   :  { %v2032_v46 = vadd.f32 %v2030_v21, %v3116_v25  ;;  %v2185_v25 = vld [vmem:[%s3418_s13 + $0x8] sm:$0xff] }
 0xe32   :  { %v2726_v48 = vpop.eup %2725  ;;  %v2612_v51 = vpack.c.bf16 %v2185_v25, %v2184_v50 }
 0xe33   :  { %2047 = vrot.lane.b32.xlu1 %v2032_v46, %s2871_s10  ;;  %v2031_v28 = vmul.f32 %v2726_v48, %v2029_v44 }
 0xe34   :  { %2613 = vmatprep.subr.bf16.mxu1 %v2612_v51 }
 0xe35   :  { %v2033_v42 = vadd.f32 %v2031_v28, %v3114_v22  ;;  %2615 = vmatpush3.bf16.msra.mxu1 %v2612_v51  ;;  %v2186_v22 = vld [vmem:[%s3418_s13 + $0x10] sm:$0xff] }
 0xe36   :  { %v2616_v53 = vpack.c.bf16 %v2187_v52, %v2186_v22 }
 0xe37   :  { %2049 = vrot.lane.b32.xlu1 %v2033_v42, %s2871_s10 }
 0xe38   :  { %2617 = vmatprep.subr.bf16.mxu1 %v2616_v53 }
 0xe39   :  { %2619 = vmatpush3.bf16.msra.mxu1 %v2616_v53 }
 0xe3a   :  { %2621 = vmatprep.subr.bf16.mxu1 %v2620_v56 }
 0xe3d   :  { %2623 = vmatpush3.bf16.msra.mxu1 %v2620_v56 }
 0xe3e   :  { %2625 = vmatprep.subr.bf16.mxu1 %v2624_v26 }
 0xe41   :  { %2627 = vmatpush3.bf16.msra.mxu1 %v2624_v26 }
 0xe42   :  { %2629 = vmatprep.subr.bf16.mxu1 %v2628_v60 }
 0xe45   :  { %2631 = vmatpush3.bf16.msra.mxu1 %v2628_v60 }
 0xe46   :  { %2633 = vmatprep.subr.bf16.mxu1 %v2632_v63 }
 0xe49   :  { %2635 = vmatpush3.bf16.msra.mxu1 %v2632_v63 }
 0xe4a   :  { %2637 = vmatprep.subr.bf16.mxu1 %v2636_v24 }
 0xe4d   :  { %2639 = vmatpush3.bf16.msra.mxu1 %v2636_v24 }
 0xe4e   :  { %2641 = vmatprep.subr.bf16.mxu1 %v2640_v4 }
 0xe51   :  { %2643 = vmatpush3.bf16.msra.mxu1 %v2640_v4 }
 0xea5   :  { %v2048_v49 = vpop.permute.xlu1 %2047 }
 0xea6   :  { %2542 = vmatprep.mubr.msk.f32.mxu0 %vm116_vm0, %v2048_v49 }
 0xea9   :  { %v2050_v29 = vpop.permute.xlu1 %2049 }
 0xeaa   :  { %2543 = vmatmul.mubr.msk.f32.vlgmr.msra.gmra.mrb[24].mxu0 %vm116_vm0, %v2050_v29 }
 0xf7d   :  { %v2544_v6 = vpop.f32.mrb[24].mxu0 }
 0xf7e   :  { %v2127_v7 = vadd.f32 %v2544_v6, %v2338_v5  ;;  %v2121_v8 = vpop.f32.mrb[25].mxu0 }
 0xf7f   :  { %v2122_v9 = vadd.f32 %v2338_v5, %v2121_v8 }
 0xf80   :  { %v2133_v10 = vmul.f32 0.70710677, %v2127_v7  ;;  %v2131_v61 = vmul.f32 0.5, %v2127_v7 }
 0xf81   :  { %v2132_v11 = vmul.f32 0.70710677, %v2122_v9  ;;  %v2130_v57 = vmul.f32 0.5, %v2122_v9 }
 0xf82   :  { %v2139_v13 = vand.u32 2147483647, %v2133_v10  ;;  %vm2135_vm9 = vcmp.ge.f32.partialorder %v2133_v10, 0.0 }
 0xf83   :  { %v2138_v14 = vand.u32 2147483647, %v2132_v11  ;;  %vm2134_vm10 = vcmp.ge.f32.partialorder %v2132_v11, 0.0  ;;  %v2137_v55 = vsel %vm2135_vm9, 1.0, %v2872_v54 }
 0xf84   :  { %v2141_v15 = vmul.f32 0.3275911, %v2139_v13  ;;  %v2167_v18 = vsub.f32 0.0, %v2139_v13  ;;  %v2136_v27 = vsel %vm2134_vm10, 1.0, %v2872_v54 }
 0xf85   :  { %v2140_v16 = vmul.f32 0.3275911, %v2138_v14  ;;  %v2166_v20 = vsub.f32 0.0, %v2138_v14 }
 0xf86   :  { %v2143_v17 = vadd.f32 1.0, %v2141_v15  ;;  %v2169_v12 = vmul.f32 %v2167_v18, %v2139_v13 }
 0xf87   :  { %v2142_v43 = vadd.f32 1.0, %v2140_v16  ;;  %v2168_v34 = vmul.f32 %v2166_v20, %v2138_v14 }
 0xf88   :  { %2727 = vrcp.f32 %v2143_v17  ;;  %v2172_v23 = vmul.f32 1.442695, %v2169_v12 }
 0xf89   :  { %2729 = vrcp.f32 %v2142_v43  ;;  %v2170_v37 = vmul.f32 1.442695, %v2168_v34 }
 0xf8a   :  { %2731 = vpow2.f32 %v2172_v23 }
 0xf8b   :  { %2733 = vpow2.f32 %v2170_v37 }
 0xf92   :  { %v2728_v30 = vpop.eup %2727 }
 0xf93   :  { %v2730_v31 = vpop.eup %2729  ;;  %v2149_v33 = vmul.f32 1.0614054, %v2728_v30 }
 0xf94   :  { %v2148_v47 = vmul.f32 1.0614054, %v2730_v31  ;;  %v2732_v50 = vpop.eup %2731 }
 0xf95   :  { %v2151_v35 = vadd.f32 -1.4531521, %v2149_v33  ;;  %v2734_v51 = vpop.eup %2733 }
 0xf96   :  { %v2150_v32 = vadd.f32 -1.4531521, %v2148_v47 }
 0xf97   :  { %v2153_v36 = vmul.f32 %v2728_v30, %v2151_v35 }
 0xf98   :  { %v2152_v38 = vmul.f32 %v2730_v31, %v2150_v32 }
 0xf99   :  { %v2155_v39 = vadd.f32 1.4214138, %v2153_v36 }
 0xf9a   :  { %v2154_v40 = vadd.f32 1.4214138, %v2152_v38 }
 0xf9b   :  { %v2157_v21 = vmul.f32 %v2728_v30, %v2155_v39 }
 0xf9c   :  { %v2156_v41 = vmul.f32 %v2730_v31, %v2154_v40 }
 0xf9d   :  { %v2159_v44 = vadd.f32 -0.28449672, %v2157_v21 }
 0xf9e   :  { %v2158_v46 = vadd.f32 -0.28449672, %v2156_v41 }
 0xf9f   :  { %v2161_v48 = vmul.f32 %v2728_v30, %v2159_v44 }
 0xfa0   :  { %v2160_v28 = vmul.f32 %v2730_v31, %v2158_v46 }
 0xfa1   :  { %v2163_v42 = vadd.f32 0.2548296, %v2161_v48 }
 0xfa2   :  { %v2162_v49 = vadd.f32 0.2548296, %v2160_v28 }
 0xfa3   :  { %v2165_v29 = vmul.f32 %v2728_v30, %v2163_v42 }
 0xfa4   :  { %v2164_v25 = vmul.f32 %v2730_v31, %v2162_v49 }
 0xfa5   :  { %v2175_v22 = vmul.f32 %v2732_v50, %v2165_v29 }
 0xfa6   :  { %v2174_v52 = vmul.f32 %v2734_v51, %v2164_v25 }
 0xfa7   :  { %v2177_v53 = vsub.f32 1.0, %v2175_v22 }
 0xfa8   :  { %v2176_v56 = vsub.f32 1.0, %v2174_v52 }
 0xfa9   :  { %v2179_v45 = vmul.f32 %v2177_v53, %v2137_v55 }
 0xfaa   :  { %v2178_v26 = vmul.f32 %v2176_v56, %v2136_v27 }
 0xfab   :  { %v2181_v19 = vadd.f32 1.0, %v2179_v45 }
 0xfac   :  { %v2180_v60 = vadd.f32 1.0, %v2178_v26 }
 0xfad   :  { %v2183_v63 = vmul.f32 %v2181_v19, %v2131_v61 }
 0xfae   :  { %v2182_v62 = vmul.f32 %v2180_v60, %v2130_v57 }
 0xfb0   :  { %2577 = vmatprep.mubr.f32.mxu1 %v2182_v62 }
 0xfb1   :  { %2578 = vmatmul.mubr.f32.vlgmr.msra.gmra.mrb[16].mxu1 %v2183_v63 }
0x1084   :  { %v2579_v3 = vpop.f32.mrb[16].mxu1 }
0x1085   :  { %v2279_v24 = vadd.f32 %v2579_v3, %v2341_v1  ;;  %v2273_v2 = vpop.f32.mrb[17].mxu1 }
0x1086   :  { %v2274_v0 = vadd.f32 %v2341_v1, %v2273_v2 }
0x1087   :  { %v2283_v4 = vadd.f32 %v2279_v24, %v3296_v58 }
0x1088   :  { %v2282_v5 = vadd.f32 %v2274_v0, %v3299_v59 }
0x1089   :  { %2285 = vst.msk [vmem:[#allocation11 + $0x8] sm:$0xff] %vm116_vm0, %v2283_v4 }
0x108a   :  { %2284 = vst.msk [vmem:[#allocation11] sm:$0xff] %vm116_vm0, %v2282_v5 }
0x108b   :  { %2836 = shalt.err (!%p2833_p8)
}
0x108c   :  { %s2837_s21 = scalar_lea.hbm %s3420_s15, 256 }
0x108d   :  { %p2838_p9 = scmp.ne.s32.totalorder %s3420_s15, %s2837_s21  ;;  %p2841_p10 = scmp.lt.u32.totalorder %s2837_s21, %s3420_s15 }
0x108f   :  { %p2843_p11 = pnand %p2841_p10, %p2838_p9 }
0x1091   :  { %2846 = shalt.err (!%p2843_p11)
}
0x1092   :  { %2297 = dma.vmem_to_hbm [thread:$0]  %s2292_s17, 256, %s3420_s15, [#allocation5], %s2857_s30, %s2857_s30, %s2858_s16  }
0x1093   :  { %2853 = dma.done.wait [#allocation5], 256  }
0x1094   :  { %2854 = vsyncadd [#allocation5], 4294967040 }
0x1095   :  { %2301 = vsyncpa [#allocation4], 1 }
0x1096   :  { %2302 = vsyncpa [#allocation7], 1 }
0x1097   :  { %2303 = vsyncpa [#allocation10], 1 }
0x1098   :  { %2304 = vsyncpa [#allocation5], 1 }

</bundles_post_ra>
